<compile_context>
chip_gen: v7x
topology: tpu7x:2x2x1
jax: 0.10.0
libtpu: 0.0.40
codegen_flags: <defaults>
</compile_context>

<pallas_src>
import jax
import jax.numpy as jnp
from jax.experimental import pallas as pl
from jax.experimental.pallas import tpu as pltpu

HID = 768      # roberta hidden size
D = 128        # word_embedding_dim
H = 4          # num_attention_heads
DK = D // H    # per-head dim
QDIM = 32      # query_vector_dim


def text_encoder_kernel(x_ref,
                        wr_ref, br_ref,
                        wqkv_ref, bqkv_ref,
                        wa_ref, ba_ref, qv_ref,
                        out_ref,
                        ctx_ref):
    TB, S, _ = x_ref.shape
    R = TB * S

    # Input arrives as f32 (no wrapper-side cast pass); cast to bf16 on the VPU for the MXU.
    x2d = x_ref[...].reshape(R, HID).astype(jnp.bfloat16)                     # (R, 768) bf16

    # reduce_dim: Linear(768 -> D).  Dropout is identity in eval mode.
    h = jnp.dot(x2d, wr_ref[...], preferred_element_type=jnp.float32) + br_ref[...]   # (R, D) f32

    # Fused QKV projection (1/sqrt(DK) already folded into the Q columns).
    qkv = jnp.dot(h.astype(jnp.bfloat16), wqkv_ref[...],
                  preferred_element_type=jnp.float32) + bqkv_ref[...]          # (R, 3D) f32

    # 128-lane-aligned slices, cast to bf16 ONCE (hoisted out of the head loop).
    q3 = qkv[:, 0 * D:1 * D].astype(jnp.bfloat16).reshape(TB, S, D)
    k3 = qkv[:, 1 * D:2 * D].astype(jnp.bfloat16).reshape(TB, S, D)
    v3 = qkv[:, 2 * D:3 * D].astype(jnp.bfloat16).reshape(TB, S, D)

    # MultiHeadSelfAttention: static loop over heads, batched over TB via einsum.
    for hh in range(H):
        sl = slice(hh * DK, (hh + 1) * DK)
        qh = q3[:, :, sl]                                                      # (TB, S, DK) bf16
        kh = k3[:, :, sl]
        vh = v3[:, :, sl]

        # Contract last dims of both operands: no explicit transpose of K.
        scores = jnp.einsum('bqd,bkd->bqk', qh, kh,
                            preferred_element_type=jnp.float32)                # (TB, S, S) f32
        scores = scores - jnp.max(scores, axis=-1, keepdims=True)
        e = jnp.exp(scores)
        attn = e / jnp.sum(e, axis=-1, keepdims=True)                          # exact divide
        ctxh = jnp.einsum('bqk,bkd->bqd', attn.astype(jnp.bfloat16), vh,
                          preferred_element_type=jnp.float32)                  # (TB, S, DK) f32
        ctx_ref[:, sl] = ctxh.reshape(R, DK).astype(jnp.bfloat16)              # lane-slice write

    ctx_bf = ctx_ref[...]                                                      # (R, D) bf16
    # second dropout is also identity in eval mode

    # AdditiveAttention
    t = jnp.tanh(jnp.dot(ctx_bf, wa_ref[...],
                         preferred_element_type=jnp.float32) + ba_ref[...])    # (R, QDIM) f32
    s = jnp.sum(t * qv_ref[...], axis=-1, keepdims=True)                       # (R, 1) f32
    s3 = s.reshape(TB, S, 1)
    s3 = s3 - jnp.max(s3, axis=1, keepdims=True)
    e = jnp.exp(s3)
    w = e / jnp.sum(e, axis=1, keepdims=True)                                  # (TB, S, 1) f32
    out_ref[...] = jnp.sum(w * ctx_bf.reshape(TB, S, D), axis=1)               # (TB, D) f32


def _chip_budget():
    """(vmem_limit_bytes, max rows per step, prefer >=2 grid steps) per TPU generation."""
    kind = ""
    try:
        kind = jax.devices()[0].device_kind.lower()
    except Exception:
        pass
    if "v7" in kind or "7x" in kind:
        # 64 MiB VMEM per TensorCore, 2 TCs -> smaller tiles, definitely want >=2 grid steps.
        return 48 << 20, 4096, True
    if "v5" in kind or "v6" in kind:
        # 128 MiB physical VMEM; default scoped limit (16/32 MiB) binds long before it.
        return 100 << 20, 8192, True
    return 64 << 20, 4096, True


def _per_step_vmem_bytes(tb, S):
    """Conservative (over-)estimate of per-grid-step VMEM use for a (tb, S) tile."""
    R = tb * S
    x_blk = R * HID * 4                       # f32 input block (double-buffered)
    out_blk = tb * D * 4                      # output block (double-buffered)
    weights = (HID * D + D * 3 * D + D * QDIM) * 2 + (4 * D + QDIM) * 4
    x_bf = R * HID * 2                        # in-kernel bf16 copy of x
    h = R * D * (4 + 2)                       # h f32 + bf16
    qkv = R * 3 * D * (4 + 2)                 # qkv f32 + bf16 q/k/v
    ctx = R * D * 2                           # bf16 ctx scratch
    scores = 3 * tb * S * S * 4               # one head live at a time (scores/exp/attn)
    tail = R * QDIM * 8 + R * 16
    return (2 * x_blk + 2 * out_blk + 2 * weights
            + x_bf + h + qkv + ctx + scores + tail + (4 << 20))


def _pick_tb(B, S, budget_bytes, row_cap, prefer_multi_step):
    """Largest divisor of B that is a multiple of 8 (or == B), fits the VMEM budget / row cap,
    preferring >=2 grid steps (pipelining + v7x 2-TC sharding)."""
    divisors = [d for d in range(1, B + 1) if B % d == 0]
    legal = [d for d in divisors if (d % 8 == 0 or d == B)]

    def fits(d):
        return d * S <= row_cap and _per_step_vmem_bytes(d, S) <= budget_bytes

    fitting = [d for d in legal if fits(d)]
    if fitting:
        if prefer_multi_step:
            multi = [d for d in fitting if B // d >= 2]
            if multi:
                return max(multi)
        return max(fitting)
    # Nothing fits the budget: best effort with the smallest legal tile.
    return min(legal)


def text_encoder(last_hidden_state, params, *, tb=None):
    B, S, _ = last_hidden_state.shape
    (wr, br, wq, bq, wk, bk, wv, bv, wa, ba, qv) = params

    # Fold the 1/sqrt(DK) attention scale into W_Q / b_Q and fuse QKV (done once at prep time).
    scale = 1.0 / jnp.sqrt(jnp.float32(DK))
    wqkv = jnp.concatenate([wq * scale, wk, wv], axis=1)     # (D, 3D)
    bqkv = jnp.concatenate([bq * scale, bk, bv], axis=1)     # (1, 3D)

    vmem_limit, row_cap, prefer_multi = _chip_budget()
    if tb is None:
        tb = _pick_tb(B, S, vmem_limit, row_cap, prefer_multi)
    assert B % tb == 0, "batch must be divisible by the batch tile"

    # Weights as bf16 MXU operands (tiny, one-time); biases / query vector stay f32.
    # The big activation tensor stays f32 and is cast in-kernel (saves an HBM round-trip).
    wr_bf = wr.astype(jnp.bfloat16)
    wqkv_bf = wqkv.astype(jnp.bfloat16)
    wa_bf = wa.astype(jnp.bfloat16)

    def fixed(shape):
        nd = len(shape)
        return pl.BlockSpec(shape, lambda b, nd=nd: (0,) * nd)

    in_specs = [
        pl.BlockSpec((tb, S, HID), lambda b: (b, 0, 0)),   # x: tb sequences per grid step (f32)
        fixed((HID, D)), fixed((1, D)),                    # reduce_dim W, b
        fixed((D, 3 * D)), fixed((1, 3 * D)),              # fused QKV W, b
        fixed((D, QDIM)), fixed((1, QDIM)),                # additive-attn linear W, b
        fixed((1, QDIM)),                                  # attention query vector
    ]

    out = pl.pallas_call(
        text_encoder_kernel,
        out_shape=jax.ShapeDtypeStruct((B, D), jnp.float32),
        grid_spec=pltpu.PrefetchScalarGridSpec(
            num_scalar_prefetch=0,
            grid=(B // tb,),
            in_specs=in_specs,
            out_specs=pl.BlockSpec((tb, D), lambda b: (b, 0)),
            scratch_shapes=[pltpu.VMEM((tb * S, D), jnp.bfloat16)],   # resident bf16 ctx buffer
        ),
        compiler_params=pltpu.CompilerParams(
            dimension_semantics=("parallel",),
            vmem_limit_bytes=int(vmem_limit),
        ),
    )(last_hidden_state, wr_bf, br, wqkv_bf, bqkv, wa_bf, ba, qv)
    return out


def init_params(key):
    """Deterministic init mirroring PyTorch shapes (weights stored as (in, out))."""
    ks = jax.random.split(key, 11)

    def lin(kw, kb, fan_in, fan_out):
        bound = 1.0 / jnp.sqrt(jnp.float32(fan_in))
        w = jax.random.uniform(kw, (fan_in, fan_out), jnp.float32, -bound, bound)
        b = jax.random.uniform(kb, (1, fan_out), jnp.float32, -bound, bound)
        return w, b

    wr, br = lin(ks[0], ks[1], HID, D)        # reduce_dim
    wq, bq = lin(ks[2], ks[3], D, D)          # W_Q
    wk, bk = lin(ks[4], ks[5], D, D)          # W_K
    wv, bv = lin(ks[6], ks[7], D, D)          # W_V
    wa, ba = lin(ks[8], ks[9], D, QDIM)       # additive attention linear
    qv = jax.random.uniform(ks[10], (1, QDIM), jnp.float32, -0.1, 0.1)  # attention_query_vector
    return (wr, br, wq, bq, wk, bk, wv, bv, wa, ba, qv)


def reference(last_hidden_state, params):
    (wr, br, wq, bq, wk, bk, wv, bv, wa, ba, qv) = params
    h = last_hidden_state @ wr + br
    q = h @ wq + bq
    k = h @ wk + bk
    v = h @ wv + bv
    B, S, _ = h.shape
    qh = q.reshape(B, S, H, DK).transpose(0, 2, 1, 3)
    kh = k.reshape(B, S, H, DK).transpose(0, 2, 1, 3)
    vh = v.reshape(B, S, H, DK).transpose(0, 2, 1, 3)
    scores = jnp.einsum("bhqd,bhkd->bhqk", qh, kh) / jnp.sqrt(jnp.float32(DK))
    attn = jax.nn.softmax(scores, axis=-1)
    ctx = jnp.einsum("bhqk,bhkd->bhqd", attn, vh).transpose(0, 2, 1, 3).reshape(B, S, D)
    t = jnp.tanh(ctx @ wa + ba)
    w = jax.nn.softmax(jnp.einsum("bsq,q->bs", t, qv[0]), axis=1)
    return jnp.einsum("bs,bsd->bd", w, ctx)


if __name__ == "__main__":
    key = jax.random.PRNGKey(0)
    k_in, k_par = jax.random.split(key)
    B, S = 2, 8
    last_hidden_state = jax.random.normal(k_in, (B, S, HID), jnp.float32)
    params = init_params(k_par)

    out = text_encoder(last_hidden_state, params)
    out = jax.block_until_ready(out)

    ref = reference(last_hidden_state, params)
    assert out.shape == (B, D)
    # bf16 matmul operands (f32 accumulation) -> compare at bf16-level tolerance
    assert jnp.allclose(out, ref, atol=2e-2, rtol=2e-2), \
        f"mismatch vs pure-JAX reference (max abs diff {jnp.max(jnp.abs(out - ref))})"
    print("KERNEL_OK")
</pallas_src>

<mosaic_0001>
module attributes {stable_mosaic.version = 11 : i64} {
  func.func @text_encoder_kernel(%arg0: i32, %arg1: memref<2x8x768xf32, #tpu.memory_space<vmem>>, %arg2: memref<768x128xbf16, #tpu.memory_space<vmem>>, %arg3: memref<1x128xf32, #tpu.memory_space<vmem>>, %arg4: memref<128x384xbf16, #tpu.memory_space<vmem>>, %arg5: memref<1x384xf32, #tpu.memory_space<vmem>>, %arg6: memref<128x32xbf16, #tpu.memory_space<vmem>>, %arg7: memref<1x32xf32, #tpu.memory_space<vmem>>, %arg8: memref<1x32xf32, #tpu.memory_space<vmem>>, %arg9: memref<2x128xf32, #tpu.memory_space<vmem>>, %arg10: memref<16x128xbf16, #tpu.memory_space<vmem>>) attributes {dimension_semantics = [#tpu.dimension_semantics<parallel>], iteration_bounds = array<i64: 1>, scalar_prefetch = 0 : i64, scratch_operands = 1 : i64, tpu.core_type = #tpu.core_type<tc>, window_params = [{transform_indices = @transform_0, window_bounds = array<i64: 2, 8, 768>}, {pipeline_mode = #tpu.pipeline_mode<synchronous>, transform_indices = @transform_1, window_bounds = array<i64: 768, 128>}, {pipeline_mode = #tpu.pipeline_mode<synchronous>, transform_indices = @transform_2, window_bounds = array<i64: 1, 128>}, {pipeline_mode = #tpu.pipeline_mode<synchronous>, transform_indices = @transform_3, window_bounds = array<i64: 128, 384>}, {pipeline_mode = #tpu.pipeline_mode<synchronous>, transform_indices = @transform_4, window_bounds = array<i64: 1, 384>}, {pipeline_mode = #tpu.pipeline_mode<synchronous>, transform_indices = @transform_5, window_bounds = array<i64: 128, 32>}, {pipeline_mode = #tpu.pipeline_mode<synchronous>, transform_indices = @transform_6, window_bounds = array<i64: 1, 32>}, {pipeline_mode = #tpu.pipeline_mode<synchronous>, transform_indices = @transform_7, window_bounds = array<i64: 1, 32>}, {transform_indices = @transform_8, window_bounds = array<i64: 2, 128>}]} {
    %c0 = arith.constant 0 : index
    %c0_0 = arith.constant 0 : index
    %c0_1 = arith.constant 0 : index
    %0 = vector.load %arg1[%c0, %c0_0, %c0_1] : memref<2x8x768xf32, #tpu.memory_space<vmem>>, vector<2x8x768xf32>
    %1 = vector.shape_cast %0 : vector<2x8x768xf32> to vector<16x768xf32>
    %2 = arith.truncf %1 : vector<16x768xf32> to vector<16x768xbf16>
    %c0_2 = arith.constant 0 : index
    %c0_3 = arith.constant 0 : index
    %3 = vector.load %arg2[%c0_2, %c0_3] : memref<768x128xbf16, #tpu.memory_space<vmem>>, vector<768x128xbf16>
    %cst = arith.constant dense<0.000000e+00> : vector<16x128xf32>
    %4 = tpu.matmul %2, %3, %cst {dimension_numbers = #tpu.dot_dimension_numbers<[1], [0], [0], [1], [0, 0, 1, 1], [], []>} : vector<16x768xbf16>, vector<768x128xbf16>, vector<16x128xf32> -> vector<16x128xf32>
    %c0_4 = arith.constant 0 : index
    %c0_5 = arith.constant 0 : index
    %5 = vector.load %arg3[%c0_4, %c0_5] : memref<1x128xf32, #tpu.memory_space<vmem>>, vector<1x128xf32>
    %6 = vector.broadcast %5 : vector<1x128xf32> to vector<16x128xf32>
    %7 = arith.addf %4, %6 : vector<16x128xf32>
    %8 = arith.truncf %7 : vector<16x128xf32> to vector<16x128xbf16>
    %c0_6 = arith.constant 0 : index
    %c0_7 = arith.constant 0 : index
    %9 = vector.load %arg4[%c0_6, %c0_7] : memref<128x384xbf16, #tpu.memory_space<vmem>>, vector<128x384xbf16>
    %cst_8 = arith.constant dense<0.000000e+00> : vector<16x384xf32>
    %10 = tpu.matmul %8, %9, %cst_8 {dimension_numbers = #tpu.dot_dimension_numbers<[1], [0], [0], [1], [0, 0, 1, 1], [], []>} : vector<16x128xbf16>, vector<128x384xbf16>, vector<16x384xf32> -> vector<16x384xf32>
    %c0_9 = arith.constant 0 : index
    %c0_10 = arith.constant 0 : index
    %11 = vector.load %arg5[%c0_9, %c0_10] : memref<1x384xf32, #tpu.memory_space<vmem>>, vector<1x384xf32>
    %12 = vector.broadcast %11 : vector<1x384xf32> to vector<16x384xf32>
    %13 = arith.addf %10, %12 : vector<16x384xf32>
    %14 = vector.extract_strided_slice %13 {offsets = [0, 0], sizes = [16, 128], strides = [1, 1]} : vector<16x384xf32> to vector<16x128xf32>
    %15 = arith.truncf %14 : vector<16x128xf32> to vector<16x128xbf16>
    %16 = vector.shape_cast %15 : vector<16x128xbf16> to vector<2x8x128xbf16>
    %17 = vector.extract_strided_slice %13 {offsets = [0, 128], sizes = [16, 128], strides = [1, 1]} : vector<16x384xf32> to vector<16x128xf32>
    %18 = arith.truncf %17 : vector<16x128xf32> to vector<16x128xbf16>
    %19 = vector.shape_cast %18 : vector<16x128xbf16> to vector<2x8x128xbf16>
    %20 = vector.extract_strided_slice %13 {offsets = [0, 256], sizes = [16, 128], strides = [1, 1]} : vector<16x384xf32> to vector<16x128xf32>
    %21 = arith.truncf %20 : vector<16x128xf32> to vector<16x128xbf16>
    %22 = vector.shape_cast %21 : vector<16x128xbf16> to vector<2x8x128xbf16>
    %23 = vector.extract_strided_slice %16 {offsets = [0, 0, 0], sizes = [2, 8, 32], strides = [1, 1, 1]} : vector<2x8x128xbf16> to vector<2x8x32xbf16>
    %24 = vector.extract_strided_slice %19 {offsets = [0, 0, 0], sizes = [2, 8, 32], strides = [1, 1, 1]} : vector<2x8x128xbf16> to vector<2x8x32xbf16>
    %25 = vector.extract_strided_slice %22 {offsets = [0, 0, 0], sizes = [2, 8, 32], strides = [1, 1, 1]} : vector<2x8x128xbf16> to vector<2x8x32xbf16>
    "tpu.trace_start"() <{level = 10 : i32, message = "bqd,bkd->bqk"}> : () -> ()
    %cst_11 = arith.constant dense<0.000000e+00> : vector<2x8x8xf32>
    %26 = tpu.matmul %23, %24, %cst_11 {dimension_numbers = #tpu.dot_dimension_numbers<[2], [2], [1], [1], [0, 0, 0, 1, 1, 1], [0], [0]>} : vector<2x8x32xbf16>, vector<2x8x32xbf16>, vector<2x8x8xf32> -> vector<2x8x8xf32>
    "tpu.trace_stop"() : () -> ()
    %cst_12 = arith.constant dense<0xFF800000> : vector<2x8xf32>
    %27 = vector.multi_reduction <maximumf>, %26, %cst_12 [2] : vector<2x8x8xf32> to vector<2x8xf32>
    %28 = vector.shape_cast %27 : vector<2x8xf32> to vector<2x8x1xf32>
    %29 = vector.broadcast %28 : vector<2x8x1xf32> to vector<2x8x8xf32>
    %30 = arith.subf %26, %29 : vector<2x8x8xf32>
    %31 = math.exp %30 : vector<2x8x8xf32>
    %cst_13 = arith.constant dense<0.000000e+00> : vector<2x8xf32>
    %32 = vector.multi_reduction <add>, %31, %cst_13 [2] : vector<2x8x8xf32> to vector<2x8xf32>
    %33 = vector.shape_cast %32 : vector<2x8xf32> to vector<2x8x1xf32>
    %34 = vector.broadcast %33 : vector<2x8x1xf32> to vector<2x8x8xf32>
    %35 = arith.divf %31, %34 : vector<2x8x8xf32>
    %36 = arith.truncf %35 : vector<2x8x8xf32> to vector<2x8x8xbf16>
    "tpu.trace_start"() <{level = 10 : i32, message = "bqk,bkd->bqd"}> : () -> ()
    %cst_14 = arith.constant dense<0.000000e+00> : vector<2x8x32xf32>
    %37 = tpu.matmul %36, %25, %cst_14 {dimension_numbers = #tpu.dot_dimension_numbers<[2], [1], [1], [2], [0, 0, 0, 1, 1, 2], [0], [0]>} : vector<2x8x8xbf16>, vector<2x8x32xbf16>, vector<2x8x32xf32> -> vector<2x8x32xf32>
    "tpu.trace_stop"() : () -> ()
    %38 = vector.shape_cast %37 : vector<2x8x32xf32> to vector<16x32xf32>
    %39 = arith.truncf %38 : vector<16x32xf32> to vector<16x32xbf16>
    %c0_15 = arith.constant 0 : index
    %c0_16 = arith.constant 0 : index
    %40 = vector.load %arg10[%c0_15, %c0_16] : memref<16x128xbf16, #tpu.memory_space<vmem>>, vector<16x32xbf16>
    tpu.vector_store %arg10[%c0_15, %c0_16], %39 {strides = array<i32>} : memref<16x128xbf16, #tpu.memory_space<vmem>>, vector<16x32xbf16>,
    %41 = vector.extract_strided_slice %16 {offsets = [0, 0, 32], sizes = [2, 8, 32], strides = [1, 1, 1]} : vector<2x8x128xbf16> to vector<2x8x32xbf16>
    %42 = vector.extract_strided_slice %19 {offsets = [0, 0, 32], sizes = [2, 8, 32], strides = [1, 1, 1]} : vector<2x8x128xbf16> to vector<2x8x32xbf16>
    %43 = vector.extract_strided_slice %22 {offsets = [0, 0, 32], sizes = [2, 8, 32], strides = [1, 1, 1]} : vector<2x8x128xbf16> to vector<2x8x32xbf16>
    "tpu.trace_start"() <{level = 10 : i32, message = "bqd,bkd->bqk"}> : () -> ()
    %cst_17 = arith.constant dense<0.000000e+00> : vector<2x8x8xf32>
    %44 = tpu.matmul %41, %42, %cst_17 {dimension_numbers = #tpu.dot_dimension_numbers<[2], [2], [1], [1], [0, 0, 0, 1, 1, 1], [0], [0]>} : vector<2x8x32xbf16>, vector<2x8x32xbf16>, vector<2x8x8xf32> -> vector<2x8x8xf32>
    "tpu.trace_stop"() : () -> ()
    %cst_18 = arith.constant dense<0xFF800000> : vector<2x8xf32>
    %45 = vector.multi_reduction <maximumf>, %44, %cst_18 [2] : vector<2x8x8xf32> to vector<2x8xf32>
    %46 = vector.shape_cast %45 : vector<2x8xf32> to vector<2x8x1xf32>
    %47 = vector.broadcast %46 : vector<2x8x1xf32> to vector<2x8x8xf32>
    %48 = arith.subf %44, %47 : vector<2x8x8xf32>
    %49 = math.exp %48 : vector<2x8x8xf32>
    %cst_19 = arith.constant dense<0.000000e+00> : vector<2x8xf32>
    %50 = vector.multi_reduction <add>, %49, %cst_19 [2] : vector<2x8x8xf32> to vector<2x8xf32>
    %51 = vector.shape_cast %50 : vector<2x8xf32> to vector<2x8x1xf32>
    %52 = vector.broadcast %51 : vector<2x8x1xf32> to vector<2x8x8xf32>
    %53 = arith.divf %49, %52 : vector<2x8x8xf32>
    %54 = arith.truncf %53 : vector<2x8x8xf32> to vector<2x8x8xbf16>
    "tpu.trace_start"() <{level = 10 : i32, message = "bqk,bkd->bqd"}> : () -> ()
    %cst_20 = arith.constant dense<0.000000e+00> : vector<2x8x32xf32>
    %55 = tpu.matmul %54, %43, %cst_20 {dimension_numbers = #tpu.dot_dimension_numbers<[2], [1], [1], [2], [0, 0, 0, 1, 1, 2], [0], [0]>} : vector<2x8x8xbf16>, vector<2x8x32xbf16>, vector<2x8x32xf32> -> vector<2x8x32xf32>
    "tpu.trace_stop"() : () -> ()
    %56 = vector.shape_cast %55 : vector<2x8x32xf32> to vector<16x32xf32>
    %57 = arith.truncf %56 : vector<16x32xf32> to vector<16x32xbf16>
    %c0_21 = arith.constant 0 : index
    %c32 = arith.constant 32 : index
    %58 = vector.load %arg10[%c0_21, %c32] : memref<16x128xbf16, #tpu.memory_space<vmem>>, vector<16x32xbf16>
    tpu.vector_store %arg10[%c0_21, %c32], %57 {strides = array<i32>} : memref<16x128xbf16, #tpu.memory_space<vmem>>, vector<16x32xbf16>,
    %59 = vector.extract_strided_slice %16 {offsets = [0, 0, 64], sizes = [2, 8, 32], strides = [1, 1, 1]} : vector<2x8x128xbf16> to vector<2x8x32xbf16>
    %60 = vector.extract_strided_slice %19 {offsets = [0, 0, 64], sizes = [2, 8, 32], strides = [1, 1, 1]} : vector<2x8x128xbf16> to vector<2x8x32xbf16>
    %61 = vector.extract_strided_slice %22 {offsets = [0, 0, 64], sizes = [2, 8, 32], strides = [1, 1, 1]} : vector<2x8x128xbf16> to vector<2x8x32xbf16>
    "tpu.trace_start"() <{level = 10 : i32, message = "bqd,bkd->bqk"}> : () -> ()
    %cst_22 = arith.constant dense<0.000000e+00> : vector<2x8x8xf32>
    %62 = tpu.matmul %59, %60, %cst_22 {dimension_numbers = #tpu.dot_dimension_numbers<[2], [2], [1], [1], [0, 0, 0, 1, 1, 1], [0], [0]>} : vector<2x8x32xbf16>, vector<2x8x32xbf16>, vector<2x8x8xf32> -> vector<2x8x8xf32>
    "tpu.trace_stop"() : () -> ()
    %cst_23 = arith.constant dense<0xFF800000> : vector<2x8xf32>
    %63 = vector.multi_reduction <maximumf>, %62, %cst_23 [2] : vector<2x8x8xf32> to vector<2x8xf32>
    %64 = vector.shape_cast %63 : vector<2x8xf32> to vector<2x8x1xf32>
    %65 = vector.broadcast %64 : vector<2x8x1xf32> to vector<2x8x8xf32>
    %66 = arith.subf %62, %65 : vector<2x8x8xf32>
    %67 = math.exp %66 : vector<2x8x8xf32>
    %cst_24 = arith.constant dense<0.000000e+00> : vector<2x8xf32>
    %68 = vector.multi_reduction <add>, %67, %cst_24 [2] : vector<2x8x8xf32> to vector<2x8xf32>
    %69 = vector.shape_cast %68 : vector<2x8xf32> to vector<2x8x1xf32>
    %70 = vector.broadcast %69 : vector<2x8x1xf32> to vector<2x8x8xf32>
    %71 = arith.divf %67, %70 : vector<2x8x8xf32>
    %72 = arith.truncf %71 : vector<2x8x8xf32> to vector<2x8x8xbf16>
    "tpu.trace_start"() <{level = 10 : i32, message = "bqk,bkd->bqd"}> : () -> ()
    %cst_25 = arith.constant dense<0.000000e+00> : vector<2x8x32xf32>
    %73 = tpu.matmul %72, %61, %cst_25 {dimension_numbers = #tpu.dot_dimension_numbers<[2], [1], [1], [2], [0, 0, 0, 1, 1, 2], [0], [0]>} : vector<2x8x8xbf16>, vector<2x8x32xbf16>, vector<2x8x32xf32> -> vector<2x8x32xf32>
    "tpu.trace_stop"() : () -> ()
    %74 = vector.shape_cast %73 : vector<2x8x32xf32> to vector<16x32xf32>
    %75 = arith.truncf %74 : vector<16x32xf32> to vector<16x32xbf16>
    %c0_26 = arith.constant 0 : index
    %c64 = arith.constant 64 : index
    %76 = vector.load %arg10[%c0_26, %c64] : memref<16x128xbf16, #tpu.memory_space<vmem>>, vector<16x32xbf16>
    tpu.vector_store %arg10[%c0_26, %c64], %75 {strides = array<i32>} : memref<16x128xbf16, #tpu.memory_space<vmem>>, vector<16x32xbf16>,
    %77 = vector.extract_strided_slice %16 {offsets = [0, 0, 96], sizes = [2, 8, 32], strides = [1, 1, 1]} : vector<2x8x128xbf16> to vector<2x8x32xbf16>
    %78 = vector.extract_strided_slice %19 {offsets = [0, 0, 96], sizes = [2, 8, 32], strides = [1, 1, 1]} : vector<2x8x128xbf16> to vector<2x8x32xbf16>
    %79 = vector.extract_strided_slice %22 {offsets = [0, 0, 96], sizes = [2, 8, 32], strides = [1, 1, 1]} : vector<2x8x128xbf16> to vector<2x8x32xbf16>
    "tpu.trace_start"() <{level = 10 : i32, message = "bqd,bkd->bqk"}> : () -> ()
    %cst_27 = arith.constant dense<0.000000e+00> : vector<2x8x8xf32>
    %80 = tpu.matmul %77, %78, %cst_27 {dimension_numbers = #tpu.dot_dimension_numbers<[2], [2], [1], [1], [0, 0, 0, 1, 1, 1], [0], [0]>} : vector<2x8x32xbf16>, vector<2x8x32xbf16>, vector<2x8x8xf32> -> vector<2x8x8xf32>
    "tpu.trace_stop"() : () -> ()
    %cst_28 = arith.constant dense<0xFF800000> : vector<2x8xf32>
    %81 = vector.multi_reduction <maximumf>, %80, %cst_28 [2] : vector<2x8x8xf32> to vector<2x8xf32>
    %82 = vector.shape_cast %81 : vector<2x8xf32> to vector<2x8x1xf32>
    %83 = vector.broadcast %82 : vector<2x8x1xf32> to vector<2x8x8xf32>
    %84 = arith.subf %80, %83 : vector<2x8x8xf32>
    %85 = math.exp %84 : vector<2x8x8xf32>
    %cst_29 = arith.constant dense<0.000000e+00> : vector<2x8xf32>
    %86 = vector.multi_reduction <add>, %85, %cst_29 [2] : vector<2x8x8xf32> to vector<2x8xf32>
    %87 = vector.shape_cast %86 : vector<2x8xf32> to vector<2x8x1xf32>
    %88 = vector.broadcast %87 : vector<2x8x1xf32> to vector<2x8x8xf32>
    %89 = arith.divf %85, %88 : vector<2x8x8xf32>
    %90 = arith.truncf %89 : vector<2x8x8xf32> to vector<2x8x8xbf16>
    "tpu.trace_start"() <{level = 10 : i32, message = "bqk,bkd->bqd"}> : () -> ()
    %cst_30 = arith.constant dense<0.000000e+00> : vector<2x8x32xf32>
    %91 = tpu.matmul %90, %79, %cst_30 {dimension_numbers = #tpu.dot_dimension_numbers<[2], [1], [1], [2], [0, 0, 0, 1, 1, 2], [0], [0]>} : vector<2x8x8xbf16>, vector<2x8x32xbf16>, vector<2x8x32xf32> -> vector<2x8x32xf32>
    "tpu.trace_stop"() : () -> ()
    %92 = vector.shape_cast %91 : vector<2x8x32xf32> to vector<16x32xf32>
    %93 = arith.truncf %92 : vector<16x32xf32> to vector<16x32xbf16>
    %c0_31 = arith.constant 0 : index
    %c96 = arith.constant 96 : index
    %94 = vector.load %arg10[%c0_31, %c96] : memref<16x128xbf16, #tpu.memory_space<vmem>>, vector<16x32xbf16>
    tpu.vector_store %arg10[%c0_31, %c96], %93 {strides = array<i32>} : memref<16x128xbf16, #tpu.memory_space<vmem>>, vector<16x32xbf16>,
    %c0_32 = arith.constant 0 : index
    %c0_33 = arith.constant 0 : index
    %95 = vector.load %arg10[%c0_32, %c0_33] : memref<16x128xbf16, #tpu.memory_space<vmem>>, vector<16x128xbf16>
    %c0_34 = arith.constant 0 : index
    %c0_35 = arith.constant 0 : index
    %96 = vector.load %arg6[%c0_34, %c0_35] : memref<128x32xbf16, #tpu.memory_space<vmem>>, vector<128x32xbf16>
    %cst_36 = arith.constant dense<0.000000e+00> : vector<16x32xf32>
    %97 = tpu.matmul %95, %96, %cst_36 {dimension_numbers = #tpu.dot_dimension_numbers<[1], [0], [0], [1], [0, 0, 1, 1], [], []>} : vector<16x128xbf16>, vector<128x32xbf16>, vector<16x32xf32> -> vector<16x32xf32>
    %c0_37 = arith.constant 0 : index
    %c0_38 = arith.constant 0 : index
    %98 = vector.load %arg7[%c0_37, %c0_38] : memref<1x32xf32, #tpu.memory_space<vmem>>, vector<1x32xf32>
    %99 = vector.broadcast %98 : vector<1x32xf32> to vector<16x32xf32>
    %100 = arith.addf %97, %99 : vector<16x32xf32>
    %101 = math.tanh %100 : vector<16x32xf32>
    %c0_39 = arith.constant 0 : index
    %c0_40 = arith.constant 0 : index
    %102 = vector.load %arg8[%c0_39, %c0_40] : memref<1x32xf32, #tpu.memory_space<vmem>>, vector<1x32xf32>
    %103 = vector.broadcast %102 : vector<1x32xf32> to vector<16x32xf32>
    %104 = arith.mulf %101, %103 : vector<16x32xf32>
    %cst_41 = arith.constant dense<0.000000e+00> : vector<16xf32>
    %105 = vector.multi_reduction <add>, %104, %cst_41 [1] : vector<16x32xf32> to vector<16xf32>
    %106 = vector.shape_cast %105 : vector<16xf32> to vector<16x1xf32>
    %107 = vector.shape_cast %106 : vector<16x1xf32> to vector<2x8x1xf32>
    %cst_42 = arith.constant dense<0xFF800000> : vector<2x1xf32>
    %108 = vector.multi_reduction <maximumf>, %107, %cst_42 [1] : vector<2x8x1xf32> to vector<2x1xf32>
    %109 = vector.shape_cast %108 : vector<2x1xf32> to vector<2x1x1xf32>
    %110 = vector.broadcast %109 : vector<2x1x1xf32> to vector<2x8x1xf32>
    %111 = arith.subf %107, %110 : vector<2x8x1xf32>
    %112 = math.exp %111 : vector<2x8x1xf32>
    %cst_43 = arith.constant dense<0.000000e+00> : vector<2x1xf32>
    %113 = vector.multi_reduction <add>, %112, %cst_43 [1] : vector<2x8x1xf32> to vector<2x1xf32>
    %114 = vector.shape_cast %113 : vector<2x1xf32> to vector<2x1x1xf32>
    %115 = vector.broadcast %114 : vector<2x1x1xf32> to vector<2x8x1xf32>
    %116 = arith.divf %112, %115 : vector<2x8x1xf32>
    %117 = vector.shape_cast %95 : vector<16x128xbf16> to vector<2x8x128xbf16>
    %118 = arith.extf %117 : vector<2x8x128xbf16> to vector<2x8x128xf32>
    %119 = vector.broadcast %116 : vector<2x8x1xf32> to vector<2x8x128xf32>
    %120 = arith.mulf %119, %118 : vector<2x8x128xf32>
    %cst_44 = arith.constant dense<0.000000e+00> : vector<2x128xf32>
    %121 = vector.multi_reduction <add>, %120, %cst_44 [1] : vector<2x8x128xf32> to vector<2x128xf32>
    %c0_45 = arith.constant 0 : index
    %c0_46 = arith.constant 0 : index
    %122 = vector.load %arg9[%c0_45, %c0_46] : memref<2x128xf32, #tpu.memory_space<vmem>>, vector<2x128xf32>
    tpu.vector_store %arg9[%c0_45, %c0_46], %121 {strides = array<i32>} : memref<2x128xf32, #tpu.memory_space<vmem>>, vector<2x128xf32>,
    return
  }
  func.func @transform_0(%arg0: i32) -> (i32, i32, i32) {
    %c0_i32 = arith.constant 0 : i32
    %c0_i32_0 = arith.constant 0 : i32
    %c0_i32_1 = arith.constant 0 : i32
    return %arg0, %c0_i32, %c0_i32_0 : i32, i32, i32
  }
  func.func @transform_1(%arg0: i32) -> (i32, i32) {
    %c0_i32 = arith.constant 0 : i32
    %c0_i32_0 = arith.constant 0 : i32
    %c0_i32_1 = arith.constant 0 : i32
    return %c0_i32, %c0_i32_0 : i32, i32
  }
  func.func @transform_2(%arg0: i32) -> (i32, i32) {
    %c0_i32 = arith.constant 0 : i32
    %c0_i32_0 = arith.constant 0 : i32
    %c0_i32_1 = arith.constant 0 : i32
    return %c0_i32, %c0_i32_0 : i32, i32
  }
  func.func @transform_3(%arg0: i32) -> (i32, i32) {
    %c0_i32 = arith.constant 0 : i32
    %c0_i32_0 = arith.constant 0 : i32
    %c0_i32_1 = arith.constant 0 : i32
    return %c0_i32, %c0_i32_0 : i32, i32
  }
  func.func @transform_4(%arg0: i32) -> (i32, i32) {
    %c0_i32 = arith.constant 0 : i32
    %c0_i32_0 = arith.constant 0 : i32
    %c0_i32_1 = arith.constant 0 : i32
    return %c0_i32, %c0_i32_0 : i32, i32
  }
  func.func @transform_5(%arg0: i32) -> (i32, i32) {
    %c0_i32 = arith.constant 0 : i32
    %c0_i32_0 = arith.constant 0 : i32
    %c0_i32_1 = arith.constant 0 : i32
    return %c0_i32, %c0_i32_0 : i32, i32
  }
  func.func @transform_6(%arg0: i32) -> (i32, i32) {
    %c0_i32 = arith.constant 0 : i32
    %c0_i32_0 = arith.constant 0 : i32
    %c0_i32_1 = arith.constant 0 : i32
    return %c0_i32, %c0_i32_0 : i32, i32
  }
  func.func @transform_7(%arg0: i32) -> (i32, i32) {
    %c0_i32 = arith.constant 0 : i32
    %c0_i32_0 = arith.constant 0 : i32
    %c0_i32_1 = arith.constant 0 : i32
    return %c0_i32, %c0_i32_0 : i32, i32
  }
  func.func @transform_8(%arg0: i32) -> (i32, i32) {
    %c0_i32 = arith.constant 0 : i32
    %c0_i32_0 = arith.constant 0 : i32
    return %arg0, %c0_i32 : i32, i32
  }
}

</mosaic_0001>

<bundles_post_ra>
// kernel: tpu_custom_call.1
= control target key start
LH: loop header
LB: loop body
LE: loop exit
PB: predicated region body
PF: predicated region fallthrough
CT: control target
= control target key end

     0   :  { %13 = vsyncpa [#allocation4], 0  ;;  %s3154_s0 = inlined_call_operand.hbm [shape: f32[2,8,768], index: 0, kind: input, shape index: {}]   ;;  %s3155_s1 = inlined_call_operand.hbm [shape: bf16[768,128], index: 1, kind: input, shape index: {}]   ;;  %s3156_s2 = inlined_call_operand.hbm [shape: f32[1,128], index: 2, kind: input, shape index: {}]   ;;  %s3157_s3 = inlined_call_operand.hbm [shape: bf16[128,384], index: 3, kind: input, shape index: {}]   ;;  %s3158_s4 = inlined_call_operand.hbm [shape: f32[1,384], index: 4, kind: input, shape index: {}]   ;;  %s3159_s5 = inlined_call_operand.hbm [shape: bf16[128,32], index: 5, kind: input, shape index: {}]   ;;  %s3160_s6 = inlined_call_operand.hbm [shape: f32[1,32], index: 6, kind: input, shape index: {}]   ;;  %s3161_s7 = inlined_call_operand.hbm [shape: f32[1,32], index: 7, kind: input, shape index: {}]   ;;  %s3162_s8 = inlined_call_operand.hbm [shape: f32[2,128], index: 8, kind: output, shape index: {}]  }
   0x1   :  { %14 = vsyncpa [#allocation7], 0 }
   0x2   :  { %15 = vsyncpa [#allocation10], 0 }
   0x3   :  { %16 = vsyncpa [#allocation13], 0 }
   0x4   :  { %17 = vsyncpa [#allocation16], 0 }
   0x5   :  { %18 = vsyncpa [#allocation5], 0  ;;  %s2779_s27 = smov [#allocation6]   ;;  %s2569_s9 = scalar_lea.hbm %s3155_s1, 6144 }
   0x6   :  { %s36_s28 = sshll.u32 %s2779_s27, 4  ;;  %p2570_p0 = scmp.ne.s32.totalorder %s3155_s1, %s2569_s9  ;;  %s37_s28 = int_to_ptr.vmem [resolvable:$true] %s36_s28 }
   0x7   :  { %p2573_p1 = scmp.lt.u32.totalorder %s2569_s9, %s3155_s1 }
   0x9   :  { %p2575_p2 = pnand %p2573_p1, %p2570_p0 }
   0xb   :  { %2578 = shalt.err (!%p2575_p2)
}
   0xc   :  { %s2579_s14 = scalar_lea.vmem %s37_s28, 6144  ;;  %p2584_p4 = scmp.lt.s32.totalorder %s37_s28, %s37_s28 }
   0xd   :  { %p2580_p3 = scmp.ne.s32.totalorder %s37_s28, %s2579_s14  ;;  %p2585_p5 = scmp.lt.s32.totalorder %s2579_s14, %s2579_s14 }
   0xf   :  { %p2586_p6 = por %p2585_p5, %p2584_p4 }
  0x11   :  { %p2587_p7 = pnand %p2586_p6, %p2580_p3 }
  0x13   :  { %2590 = shalt.err (!%p2587_p7)
}
  0x14   :  { %s2780_s15 = smov 64   ;;  %s2781_s16 = smov 4  }
  0x15   :  { %42 = dma.hbm_to_vmem [thread:$0]  %s3155_s1, 6144, %s37_s28, [#allocation7], %s2780_s15, %s2780_s15, %s2781_s16  }
  0x16   :  { %s2782_s19 = smov [#allocation9]   ;;  %s2591_s23 = scalar_lea.hbm %s3157_s3, 3072 }
  0x17   :  { %s58_s20 = sshll.u32 %s2782_s19, 4  ;;  %p2592_p8 = scmp.ne.s32.totalorder %s3157_s3, %s2591_s23  ;;  %s59_s20 = int_to_ptr.vmem [resolvable:$true] %s58_s20 }
  0x18   :  { %p2595_p9 = scmp.lt.u32.totalorder %s2591_s23, %s3157_s3 }
  0x1a   :  { %p2597_p10 = pnand %p2595_p9, %p2592_p8 }
  0x1c   :  { %2600 = shalt.err (!%p2597_p10)
}
  0x1d   :  { %s2601_s29 = scalar_lea.vmem %s59_s20, 3072  ;;  %p2606_p12 = scmp.lt.s32.totalorder %s59_s20, %s59_s20 }
  0x1e   :  { %p2602_p11 = scmp.ne.s32.totalorder %s59_s20, %s2601_s29  ;;  %p2607_p13 = scmp.lt.s32.totalorder %s2601_s29, %s2601_s29 }
  0x20   :  { %p2608_p0 = por %p2607_p13, %p2606_p12 }
  0x22   :  { %p2609_p1 = pnand %p2608_p0, %p2602_p11 }
  0x24   :  { %2612 = shalt.err (!%p2609_p1)
}
  0x25   :  { %s2783_s1 = smov 192   ;;  %s2784_s28 = smov 12  }
  0x26   :  { %64 = dma.hbm_to_vmem [thread:$0]  %s3157_s3, 3072, %s59_s20, [#allocation10], %s2783_s1, %s2783_s1, %s2784_s28  }
  0x27   :  { %s2785_s10 = smov [#allocation12]   ;;  %s2786_s12 = smov [#allocation3]  }
  0x28   :  { %s80_s11 = sshll.u32 %s2785_s10, 4  ;;  %s24_s13 = sshll.u32 %s2786_s12, 4  ;;  %s81_s11 = int_to_ptr.vmem [resolvable:$true] %s80_s11  ;;  %s2871_s13 = int_to_ptr.vmem [resolvable:$true] %s24_s13 }
  0x29   :  { %s2613_s18 = scalar_lea.hbm %s3159_s5, 1024 }
  0x2a   :  { %p2614_p2 = scmp.ne.s32.totalorder %s3159_s5, %s2613_s18  ;;  %p2617_p3 = scmp.lt.u32.totalorder %s2613_s18, %s3159_s5 }
  0x2c   :  { %p2619_p4 = pnand %p2617_p3, %p2614_p2 }
  0x2e   :  { %2622 = shalt.err (!%p2619_p4)
}
  0x2f   :  { %s2623_s3 = scalar_lea.vmem %s81_s11, 1024  ;;  %p2628_p6 = scmp.lt.s32.totalorder %s81_s11, %s81_s11 }
  0x30   :  { %p2624_p5 = scmp.ne.s32.totalorder %s81_s11, %s2623_s3  ;;  %p2629_p7 = scmp.lt.s32.totalorder %s2623_s3, %s2623_s3 }
  0x32   :  { %p2630_p8 = por %p2629_p7, %p2628_p6 }
  0x34   :  { %p2631_p9 = pnand %p2630_p8, %p2624_p5 }
  0x36   :  { %2634 = shalt.err (!%p2631_p9)
}
  0x37   :  { %86 = dma.hbm_to_vmem [thread:$0]  %s3159_s5, 1024, %s81_s11, [#allocation13], %s2780_s15, %s2780_s15, %s2781_s16  }
  0x38   :  { %s2635_s27 = scalar_lea.hbm %s3154_s0, 1536 }
  0x39   :  { %p2636_p10 = scmp.ne.s32.totalorder %s3154_s0, %s2635_s27  ;;  %p2639_p11 = scmp.lt.u32.totalorder %s2635_s27, %s3154_s0 }
  0x3b   :  { %p2641_p12 = pnand %p2639_p11, %p2636_p10 }
  0x3d   :  { %2644 = shalt.err (!%p2641_p12)
}
  0x3e   :  { %s2645_s9 = scalar_lea.vmem %s2871_s13, 1536  ;;  %p2650_p0 = scmp.lt.s32.totalorder %s2871_s13, %s2871_s13 }
  0x3f   :  { %p2646_p13 = scmp.ne.s32.totalorder %s2871_s13, %s2645_s9  ;;  %p2651_p1 = scmp.lt.s32.totalorder %s2645_s9, %s2645_s9 }
  0x41   :  { %p2652_p2 = por %p2651_p1, %p2650_p0 }
  0x43   :  { %p2653_p3 = pnand %p2652_p2, %p2646_p13 }
  0x45   :  { %2656 = shalt.err (!%p2653_p3)
}
  0x46   :  { %s2787_s5 = smov 768   ;;  %s2788_s16 = smov 48  }
  0x47   :  { %30 = dma.hbm_to_vmem [thread:$0]  %s3154_s0, 1536, %s2871_s13, [#allocation4], %s2787_s5, %s2787_s5, %s2788_s16  }
  0x48   :  { %s2789_s12 = smov [#allocation8]   ;;  %s2790_s17 = smov [#allocation11]  }
  0x49   :  { %s49_s14 = sshll.u32 %s2789_s12, 4  ;;  %s71_s18 = sshll.u32 %s2790_s17, 4  ;;  %s50_s14 = int_to_ptr.vmem [resolvable:$true] %s49_s14  ;;  %s72_s18 = int_to_ptr.vmem [resolvable:$true] %s71_s18 }
  0x4a   :  { %s2657_s22 = scalar_lea.hbm %s3156_s2, 16 }
  0x4b   :  { %p2658_p4 = scmp.ne.s32.totalorder %s3156_s2, %s2657_s22  ;;  %p2661_p5 = scmp.lt.u32.totalorder %s2657_s22, %s3156_s2 }
  0x4d   :  { %p2663_p6 = pnand %p2661_p5, %p2658_p4 }
  0x4f   :  { %2666 = shalt.err (!%p2663_p6)
}
  0x50   :  { %s2667_s0 = scalar_lea.vmem %s50_s14, 16  ;;  %s2671_s13 = scalar_lea.vmem %s50_s14, 32 }
  0x51   :  { %p2668_p7 = scmp.ne.s32.totalorder %s50_s14, %s2667_s0  ;;  %p2672_p8 = scmp.lt.s32.totalorder %s50_s14, %s50_s14 }
  0x52   :  { %p2673_p9 = scmp.lt.s32.totalorder %s2671_s13, %s2667_s0 }
  0x54   :  { %p2674_p10 = por %p2673_p9, %p2672_p8 }
  0x56   :  { %p2675_p11 = pnand %p2674_p10, %p2668_p7 }
  0x58   :  { %2678 = shalt.err (!%p2675_p11)
}
  0x59   :  { %52 = dma.hbm_to_vmem [thread:$0]  %s3156_s2, 16, %s50_s14, [#allocation7]  }
  0x5a   :  { %s2679_s1 = scalar_lea.hbm %s3158_s4, 48 }
  0x5b   :  { %p2680_p12 = scmp.ne.s32.totalorder %s3158_s4, %s2679_s1  ;;  %p2683_p13 = scmp.lt.u32.totalorder %s2679_s1, %s3158_s4 }
  0x5d   :  { %p2685_p0 = pnand %p2683_p13, %p2680_p12 }
  0x5f   :  { %2688 = shalt.err (!%p2685_p0)
}
  0x60   :  { %s2689_s16 = scalar_lea.vmem %s72_s18, 48  ;;  %s2693_s10 = scalar_lea.vmem %s72_s18, 64 }
  0x61   :  { %p2690_p1 = scmp.ne.s32.totalorder %s72_s18, %s2689_s16  ;;  %p2694_p2 = scmp.lt.s32.totalorder %s72_s18, %s72_s18 }
  0x62   :  { %p2695_p3 = scmp.lt.s32.totalorder %s2693_s10, %s2689_s16 }
  0x64   :  { %p2696_p4 = por %p2695_p3, %p2694_p2 }
  0x66   :  { %p2697_p5 = pnand %p2696_p4, %p2690_p1 }
  0x68   :  { %2700 = shalt.err (!%p2697_p5)
}
  0x69   :  { %74 = dma.hbm_to_vmem [thread:$0]  %s3158_s4, 48, %s72_s18, [#allocation10]  }
  0x6a   :  { %s2791_s12 = smov [#allocation14]   ;;  %s2792_s17 = smov [#allocation15]  }
  0x6b   :  { %s93_s14 = sshll.u32 %s2791_s12, 4  ;;  %s103_s19 = sshll.u32 %s2792_s17, 4  ;;  %s94_s14 = int_to_ptr.vmem [resolvable:$true] %s93_s14  ;;  %s104_s19 = int_to_ptr.vmem [resolvable:$true] %s103_s19 }
  0x6c   :  { %s2701_s23 = scalar_lea.hbm %s3160_s6, 16 }
  0x6d   :  { %p2702_p6 = scmp.ne.s32.totalorder %s3160_s6, %s2701_s23  ;;  %p2705_p7 = scmp.lt.u32.totalorder %s2701_s23, %s3160_s6 }
  0x6f   :  { %p2707_p8 = pnand %p2705_p7, %p2702_p6 }
  0x71   :  { %2710 = shalt.err (!%p2707_p8)
}
  0x72   :  { %s2711_s4 = scalar_lea.vmem %s94_s14, 16  ;;  %s2715_s18 = scalar_lea.vmem %s94_s14, 32 }
  0x73   :  { %p2712_p9 = scmp.ne.s32.totalorder %s94_s14, %s2711_s4  ;;  %p2716_p10 = scmp.lt.s32.totalorder %s94_s14, %s94_s14 }
  0x74   :  { %p2717_p11 = scmp.lt.s32.totalorder %s2715_s18, %s2711_s4 }
  0x76   :  { %p2718_p12 = por %p2717_p11, %p2716_p10 }
  0x78   :  { %p2719_p13 = pnand %p2718_p12, %p2712_p9 }
  0x7a   :  { %2722 = shalt.err (!%p2719_p13)
}
  0x7b   :  { %96 = dma.hbm_to_vmem [thread:$0]  %s3160_s6, 16, %s94_s14, [#allocation13]  }
  0x7c   :  { %s2723_s29 = scalar_lea.hbm %s3161_s7, 16 }
  0x7d   :  { %p2724_p0 = scmp.ne.s32.totalorder %s3161_s7, %s2723_s29  ;;  %p2727_p1 = scmp.lt.u32.totalorder %s2723_s29, %s3161_s7 }
  0x7f   :  { %p2729_p2 = pnand %p2727_p1, %p2724_p0 }
  0x81   :  { %2732 = shalt.err (!%p2729_p2)
}
  0x82   :  { %s2733_s5 = scalar_lea.vmem %s104_s19, 16  ;;  %s2737_s16 = scalar_lea.vmem %s104_s19, 32 }
  0x83   :  { %p2734_p3 = scmp.ne.s32.totalorder %s104_s19, %s2733_s5  ;;  %p2738_p4 = scmp.lt.s32.totalorder %s104_s19, %s104_s19 }
  0x84   :  { %p2739_p5 = scmp.lt.s32.totalorder %s2737_s16, %s2733_s5 }
  0x86   :  { %p2740_p6 = por %p2739_p5, %p2738_p4 }
  0x88   :  { %p2741_p7 = pnand %p2740_p6, %p2734_p3 }
  0x8a   :  { %2744 = shalt.err (!%p2741_p7)
}
  0x8b   :  { %106 = dma.hbm_to_vmem [thread:$0]  %s3161_s7, 16, %s104_s19, [#allocation16]  }
  0x8c   :  { %2767 = dma.done.wait [#allocation4], 1536  }
  0x8d   :  { %2768 = vsyncadd [#allocation4], 4294965760 }
  0x8e   :  { %2769 = dma.done.wait [#allocation7], 6160  }
  0x8f   :  { %2770 = vsyncadd [#allocation7], 4294961136 }
  0x90   :  { %2771 = dma.done.wait [#allocation10], 3120  }
  0x91   :  { %2772 = vsyncadd [#allocation10], 4294964176 }
  0x92   :  { %2773 = dma.done.wait [#allocation13], 1040  }
  0x93   :  { %2774 = vsyncadd [#allocation13], 4294966256 }
  0x94   :  { %2775 = dma.done.wait [#allocation16], 16  }
  0x95   :  { %2776 = vsyncadd [#allocation16], 4294967280  ;;  %v2435_v0 = vld [vmem:[#allocation6 + $0x40] sm:$0xff]   ;;  %v2439_v4 = vld [vmem:[#allocation6 + $0x48] sm:$0xff]   ;;  %vm2795_vm0 = vmmov 0   ;;  %vm944_vm1 = vcmask 261120  }
  0x96   :  { %v2436_v1 = vld [vmem:[#allocation6] sm:$0xff]   ;;  %2163 = vmatprep.subr.bf16.mxu0 %v2435_v0  ;;  %v2440_v5 = vld [vmem:[#allocation6 + $0x8] sm:$0xff]   ;;  %v2443_v8 = vld [vmem:[#allocation6 + $0x50] sm:$0xff]   ;;  %vm1065_vm2 = vcmask 1043456   ;;  %vm1037_vm3 = vcmask 64512   ;;  %s2796_s7 = smov 96  }
  0x97   :  { %v2437_v2 = vld [vmem:[#allocation6 + $0xc0] sm:$0xff]   ;;  %2164 = vmatpush3.bf16.msra.mxu0 %v2436_v1  ;;  %v2441_v6 = vld [vmem:[#allocation6 + $0xc8] sm:$0xff]   ;;  %v2444_v9 = vld [vmem:[#allocation6 + $0x10] sm:$0xff]   ;;  %s2797_s2 = smov 32   ;;  %vm1382_vm4 = vcmask 523520   ;;  %vm1609_vm5 = vcmask 785920  }
  0x98   :  { %v2438_v3 = vld [vmem:[#allocation6 + $0x80] sm:$0xff]   ;;  %2185 = vmatprep.subr.bf16.mxu1 %v2437_v2  ;;  %2165 = vmatprep.subr.bf16.mxu0 %v2439_v4  ;;  %v2442_v7 = vld [vmem:[#allocation6 + $0x88] sm:$0xff]   ;;  %v2445_v10 = vld [vmem:[#allocation6 + $0xd0] sm:$0xff]   ;;  %v2793_v4 = vmov 0.0   ;;  %vm1836_vm6 = vcmask 1048320   ;;  %vm2027_vm7 = vcmask 1041409  }
  0x99   :  { %2186 = vmatpush3.bf16.msra.mxu1 %v2438_v3  ;;  %v2446_v11 = vld [vmem:[#allocation6 + $0x90] sm:$0xff]   ;;  %v2447_v12 = vld [vmem:[#allocation6 + $0x58] sm:$0xff]   ;;  %v2451_v16 = vld [vmem:[#allocation6 + $0x60] sm:$0xff]  }
  0x9a   :  { %2187 = vmatprep.subr.bf16.mxu1 %v2441_v6  ;;  %v2448_v13 = vld [vmem:[#allocation6 + $0x18] sm:$0xff]   ;;  %v2452_v17 = vld [vmem:[#allocation6 + $0x20] sm:$0xff]   ;;  %v2455_v20 = vld [vmem:[#allocation6 + $0x68] sm:$0xff]  }
  0x9b   :  { %2166 = vmatpush3.bf16.msra.mxu0 %v2440_v5  ;;  %v2449_v14 = vld [vmem:[#allocation6 + $0xd8] sm:$0xff]   ;;  %v2453_v18 = vld [vmem:[#allocation6 + $0xe0] sm:$0xff]   ;;  %v2456_v21 = vld [vmem:[#allocation6 + $0x28] sm:$0xff]  }
  0x9c   :  { %2167 = vmatprep.subr.bf16.mxu0 %v2443_v8  ;;  %v2450_v15 = vld [vmem:[#allocation6 + $0x98] sm:$0xff]   ;;  %v2454_v19 = vld [vmem:[#allocation6 + $0xa0] sm:$0xff]   ;;  %v2457_v22 = vld [vmem:[#allocation6 + $0xe8] sm:$0xff]  }
  0x9d   :  { %2188 = vmatpush3.bf16.msra.mxu1 %v2442_v7  ;;  %v2458_v23 = vld [vmem:[#allocation6 + $0xa8] sm:$0xff]   ;;  %v2459_v24 = vld [vmem:[#allocation6 + $0x70] sm:$0xff]   ;;  %v2463_v28 = vld [vmem:[#allocation6 + $0x78] sm:$0xff]  }
  0x9e   :  { %2189 = vmatprep.subr.bf16.mxu1 %v2445_v10  ;;  %v2460_v25 = vld [vmem:[#allocation6 + $0x30] sm:$0xff]   ;;  %v2464_v29 = vld [vmem:[#allocation6 + $0x38] sm:$0xff]   ;;  %v133_v31 = vld [vmem:[#allocation3 + $0x8] sm:$0xff] }
  0x9f   :  { %2168 = vmatpush3.bf16.msra.mxu0 %v2444_v9  ;;  %v2461_v26 = vld [vmem:[#allocation6 + $0xf0] sm:$0xff]   ;;  %v2465_v30 = vld [vmem:[#allocation6 + $0xf8] sm:$0xff]   ;;  %v132_v35 = vld [vmem:[#allocation3] sm:$0xff] }
  0xa0   :  { %2169 = vmatprep.subr.bf16.mxu0 %v2447_v12  ;;  %v2462_v27 = vld [vmem:[#allocation6 + $0xb0] sm:$0xff]   ;;  %v139_v32 = vld [vmem:[#allocation3 + $0x38] sm:$0xff]  ;;  %v2467_v38 = vld [vmem:[#allocation6 + $0x140] sm:$0xff]  }
  0xa1   :  { %2190 = vmatpush3.bf16.msra.mxu1 %v2446_v11  ;;  %v145_v33 = vpack.c.bf16 %v139_v32, %v133_v31  ;;  %v2466_v34 = vld [vmem:[#allocation6 + $0xb8] sm:$0xff]   ;;  %v138_v36 = vld [vmem:[#allocation3 + $0x30] sm:$0xff]  ;;  %v141_v40 = vld [vmem:[#allocation3 + $0x48] sm:$0xff] }
  0xa2   :  { %2191 = vmatprep.subr.bf16.mxu1 %v2449_v14  ;;  %v144_v37 = vpack.c.bf16 %v138_v36, %v132_v35  ;;  %v135_v39 = vld [vmem:[#allocation3 + $0x18] sm:$0xff]  ;;  %v2468_v42 = vld [vmem:[#allocation6 + $0x100] sm:$0xff]   ;;  %v134_v43 = vld [vmem:[#allocation3 + $0x10] sm:$0xff] }
  0xa3   :  { %2170 = vmatpush3.bf16.msra.mxu0 %v2448_v13  ;;  %573 = vmatprep.mubr.bf16.mxu0 %v145_v33  ;;  %v147_v41 = vpack.c.bf16 %v141_v40, %v135_v39  ;;  %v140_v44 = vld [vmem:[#allocation3 + $0x40] sm:$0xff]  ;;  %v2469_v46 = vld [vmem:[#allocation6 + $0x148] sm:$0xff]   ;;  %v2471_v48 = vld [vmem:[#allocation6 + $0x150] sm:$0xff]  }
  0xa4   :  { %2171 = vmatprep.subr.bf16.mxu0 %v2451_v16  ;;  %v146_v45 = vpack.c.bf16 %v140_v44, %v134_v43  ;;  %v2470_v47 = vld [vmem:[#allocation6 + $0x108] sm:$0xff]   ;;  %v2472_v49 = vld [vmem:[#allocation6 + $0x110] sm:$0xff]   ;;  %v2473_v50 = vld [vmem:[#allocation6 + $0x158] sm:$0xff]  }
  0xa5   :  { %2192 = vmatpush3.bf16.msra.mxu1 %v2450_v15  ;;  %614 = vmatprep.mubr.bf16.mxu1 %v147_v41  ;;  %v2474_v51 = vld [vmem:[#allocation6 + $0x118] sm:$0xff]   ;;  %v2475_v52 = vld [vmem:[#allocation6 + $0x160] sm:$0xff]   ;;  %v2477_v54 = vld [vmem:[#allocation6 + $0x168] sm:$0xff]  }
  0xa6   :  { %2193 = vmatprep.subr.bf16.mxu1 %v2453_v18  ;;  %v2476_v53 = vld [vmem:[#allocation6 + $0x120] sm:$0xff]   ;;  %v137_v55 = vld [vmem:[#allocation3 + $0x28] sm:$0xff]  ;;  %v143_v57 = vld [vmem:[#allocation3 + $0x58] sm:$0xff] }
  0xa7   :  { %2172 = vmatpush3.bf16.msra.mxu0 %v2452_v17  ;;  %v2478_v56 = vld [vmem:[#allocation6 + $0x128] sm:$0xff]   ;;  %v2479_v58 = vld [vmem:[#allocation6 + $0x170] sm:$0xff]   ;;  %v149_v59 = vpack.c.bf16 %v143_v57, %v137_v55  ;;  %v2481_v61 = vld [vmem:[#allocation6 + $0x178] sm:$0xff]  }
  0xa8   :  { %2173 = vmatprep.subr.bf16.mxu0 %v2455_v20  ;;  %v2480_v60 = vld [vmem:[#allocation6 + $0x130] sm:$0xff]   ;;  %v2482_v62 = vld [vmem:[#allocation6 + $0x138] sm:$0xff]   ;;  %v136_v63 = vld [vmem:[#allocation3 + $0x20] sm:$0xff] }
  0xa9   :  { %2194 = vmatpush3.bf16.msra.mxu1 %v2454_v19  ;;  %v142_v0 = vld [vmem:[#allocation3 + $0x50] sm:$0xff]  ;;  %v2489_v6 = vld [vmem:[#allocation9 + $0x1c] ss:$12 sps:$4 sm:$0xff]   ;;  %v2487_v7 = vld [vmem:[#allocation9 + $0x18] ss:$12 sps:$4 sm:$0xff]  }
  0xaa   :  { %2195 = vmatprep.subr.bf16.mxu1 %v2457_v22  ;;  %v148_v1 = vpack.c.bf16 %v142_v0, %v136_v63  ;;  %v2483_v2 = vld [vmem:[#allocation9] ss:$12 sps:$4 sm:$0xff]   ;;  %v2485_v3 = vld [vmem:[#allocation9 + $0x4] ss:$12 sps:$4 sm:$0xff]   ;;  %v2486_v5 = vld [vmem:[#allocation9 + $0x8] ss:$12 sps:$4 sm:$0xff]  }
  0xab   :  { %2174 = vmatpush3.bf16.msra.mxu0 %v2456_v21  ;;  %v2490_v8 = vld [vmem:[#allocation9 + $0x20] ss:$12 sps:$4 sm:$0xff]   ;;  %v2491_v10 = vld [vmem:[#allocation9 + $0x30] ss:$12 sps:$4 sm:$0xff]   ;;  %v2494_v11 = vld [vmem:[#allocation9 + $0x38] ss:$12 sps:$4 sm:$0xff]  }
  0xac   :  { %2175 = vmatprep.subr.bf16.mxu0 %v2459_v24  ;;  %v2493_v9 = vld [vmem:[#allocation9 + $0x34] ss:$12 sps:$4 sm:$0xff]   ;;  %v2497_v12 = vld [vmem:[#allocation9 + $0x4c] ss:$12 sps:$4 sm:$0xff]   ;;  %v2498_v14 = vld [vmem:[#allocation9 + $0x50] ss:$12 sps:$4 sm:$0xff]  }
  0xad   :  { %2196 = vmatpush3.bf16.msra.mxu1 %v2458_v23  ;;  %v2495_v13 = vld [vmem:[#allocation9 + $0x48] ss:$12 sps:$4 sm:$0xff]   ;;  %v2501_v15 = vld [vmem:[#allocation9 + $0x64] ss:$12 sps:$4 sm:$0xff]   ;;  %v2499_v16 = vld [vmem:[#allocation9 + $0x60] ss:$12 sps:$4 sm:$0xff]  }
  0xae   :  { %2197 = vmatprep.subr.bf16.mxu1 %v2461_v26  ;;  %v2502_v17 = vld [vmem:[#allocation9 + $0x68] ss:$12 sps:$4 sm:$0xff]   ;;  %v2503_v19 = vld [vmem:[#allocation9 + $0x78] ss:$12 sps:$4 sm:$0xff]   ;;  %v2506_v20 = vld [vmem:[#allocation9 + $0x80] ss:$12 sps:$4 sm:$0xff]  }
  0xaf   :  { %2176 = vmatpush3.bf16.msra.mxu0 %v2460_v25  ;;  %v2505_v18 = vld [vmem:[#allocation9 + $0x7c] ss:$12 sps:$4 sm:$0xff]   ;;  %v2509_v21 = vld [vmem:[#allocation9 + $0x94] ss:$12 sps:$4 sm:$0xff]   ;;  %v2510_v23 = vld [vmem:[#allocation9 + $0x98] ss:$12 sps:$4 sm:$0xff]  }
  0xb0   :  { %2177 = vmatprep.subr.bf16.mxu0 %v2463_v28  ;;  %v2507_v22 = vld [vmem:[#allocation9 + $0x90] ss:$12 sps:$4 sm:$0xff]   ;;  %v2513_v24 = vld [vmem:[#allocation9 + $0xac] ss:$12 sps:$4 sm:$0xff]   ;;  %v2511_v25 = vld [vmem:[#allocation9 + $0xa8] ss:$12 sps:$4 sm:$0xff]  }
  0xb1   :  { %2198 = vmatpush3.bf16.msra.mxu1 %v2462_v27  ;;  %v2514_v26 = vld [vmem:[#allocation9 + $0xb0] ss:$12 sps:$4 sm:$0xff]   ;;  %v2794_v27 = vmov 0   ;;  %v697_v57 = vld [vmem:[#allocation11] sm:$0x7] }
  0xb2   :  { %2199 = vmatprep.subr.bf16.mxu1 %v2465_v30 }
  0xb3   :  { %2178 = vmatpush3.bf16.msra.mxu0 %v2464_v29  ;;  %v2050_v29 = vld [vmem:[#allocation8] ss:$0 sm:$0xff] }
  0xb4   :  { %2207 = vmatprep.subr.bf16.mxu0 %v2467_v38 }
  0xb5   :  { %2200 = vmatpush3.bf16.msra.mxu1 %v2466_v34 }
  0xb6   :  { %574 = vmatmul.mubr.bf16.vlgmr.msra.gmra.mrb[0].mxu0 %v144_v37  ;;  %842 = vmatprep.subr.bf16.mxu1 %v2485_v3 }
  0xb7   :  { %2208 = vmatpush3.bf16.msra.mxu0 %v2468_v42  ;;  %655 = vmatprep.mubr.bf16.mxu0 %v149_v59 }
  0xb8   :  { %615 = vmatmul.mubr.bf16.vlgmr.msra.gmra.mrb[0].mxu1 %v146_v45  ;;  %2209 = vmatprep.subr.bf16.mxu0 %v2469_v46 }
  0xb9   :  { %843 = vmatpush1.bf16.msra.mxu1 %v2483_v2  ;;  %874 = vmatprep.mubr.bf16.mxu1 %v2794_v27 }
  0xba   :  { %844 = vmatprep.subr.bf16.mxu1 %v2489_v6 }
  0xbb   :  { %2210 = vmatpush3.bf16.msra.mxu0 %v2470_v47 }
  0xbc   :  { %2211 = vmatprep.subr.bf16.mxu0 %v2471_v48 }
  0xbd   :  { %845 = vmatpush1.bf16.msra.mxu1 %v2487_v7 }
  0xbe   :  { %846 = vmatprep.subr.bf16.mxu1 %v2493_v9 }
  0xbf   :  { %2212 = vmatpush3.bf16.msra.mxu0 %v2472_v49 }
  0xc0   :  { %2213 = vmatprep.subr.bf16.mxu0 %v2473_v50 }
  0xc1   :  { %847 = vmatpush1.bf16.msra.mxu1 %v2491_v10 }
  0xc2   :  { %848 = vmatprep.subr.bf16.mxu1 %v2497_v12 }
  0xc3   :  { %2214 = vmatpush3.bf16.msra.mxu0 %v2474_v51 }
  0xc4   :  { %2215 = vmatprep.subr.bf16.mxu0 %v2475_v52 }
  0xc5   :  { %849 = vmatpush1.bf16.msra.mxu1 %v2495_v13 }
  0xc6   :  { %850 = vmatprep.subr.bf16.mxu1 %v2501_v15 }
  0xc7   :  { %2216 = vmatpush3.bf16.msra.mxu0 %v2476_v53 }
  0xc8   :  { %2217 = vmatprep.subr.bf16.mxu0 %v2477_v54  ;;  %v699_v54 = vlaneseq }
  0xc9   :  { %851 = vmatpush1.bf16.msra.mxu1 %v2499_v16 }
  0xca   :  { %852 = vmatprep.subr.bf16.mxu1 %v2505_v18  ;;  %v700_v55 = vshrl.u32 %v699_v54, 7 }
  0xcb   :  { %2218 = vmatpush3.bf16.msra.mxu0 %v2478_v56 }
  0xcc   :  { %2219 = vmatprep.subr.bf16.mxu0 %v2479_v58  ;;  %v705_v56 = vsub.s32 1, %v700_v55  ;;  %v709_v58 = vsub.s32 2, %v700_v55 }
  0xcd   :  { %853 = vmatpush1.bf16.msra.mxu1 %v2503_v19 }
  0xce   :  { %854 = vmatprep.subr.bf16.mxu1 %v2509_v21  ;;  %v706_v59 = vrot.slane %v697_v57, %v705_v56  ;;  %v710_v63 = vrot.slane %v697_v57, %v709_v58 }
  0xcf   :  { %2220 = vmatpush3.bf16.msra.mxu0 %v2480_v60  ;;  %v701_v60 = vsub.s32 0, %v700_v55 }
  0xd0   :  { %2221 = vmatprep.subr.bf16.mxu0 %v2481_v61 }
  0xd1   :  { %855 = vmatpush1.bf16.msra.mxu1 %v2507_v22  ;;  %v702_v9 = vrot.slane %v697_v57, %v701_v60 }
  0xd2   :  { %856 = vmatprep.subr.bf16.mxu1 %v2513_v24 }
  0xd3   :  { %2222 = vmatpush3.bf16.msra.mxu0 %v2482_v62 }
  0xd4   :  { %2279 = vmatprep.subr.bf16.mxu0 %v2793_v4 }
  0xd5   :  { %857 = vmatpush1.bf16.msra.mxu1 %v2511_v25 }
  0xd6   :  { %656 = vmatmul.mubr.bf16.vlgmr.msra.gmra.mrb[4].mxu0 %v148_v1  ;;  %2299 = vmatprep.subr.bf16.mxu1 %v2793_v4 }
  0xd7   :  { %2280 = vmatpush3.bf16.msra.mxu0 %v2486_v5  ;;  %2295 = vmatprep.mubr.msk.bf16.mxu0 %vm2795_vm0, %v2793_v4 }
  0xd8   :  { %2281 = vmatprep.subr.bf16.mxu0 %v2793_v4 }
  0xdb   :  { %2282 = vmatpush3.bf16.msra.mxu0 %v2490_v8 }
  0xdc   :  { %2283 = vmatprep.subr.bf16.mxu0 %v2793_v4 }
  0xdf   :  { %2284 = vmatpush3.bf16.msra.mxu0 %v2494_v11 }
  0xe0   :  { %2285 = vmatprep.subr.bf16.mxu0 %v2793_v4 }
  0xe3   :  { %2286 = vmatpush3.bf16.msra.mxu0 %v2498_v14 }
  0xe4   :  { %2287 = vmatprep.subr.bf16.mxu0 %v2793_v4 }
  0xe7   :  { %2288 = vmatpush3.bf16.msra.mxu0 %v2502_v17 }
  0xe8   :  { %2289 = vmatprep.subr.bf16.mxu0 %v2793_v4 }
  0xeb   :  { %2290 = vmatpush3.bf16.msra.mxu0 %v2506_v20 }
  0xec   :  { %2291 = vmatprep.subr.bf16.mxu0 %v2793_v4 }
  0xef   :  { %2292 = vmatpush3.bf16.msra.mxu0 %v2510_v23 }
  0xf0   :  { %2293 = vmatprep.subr.bf16.mxu0 %v2793_v4 }
  0xf3   :  { %2294 = vmatpush3.bf16.msra.mxu0 %v2514_v26 }
  0xf4   :  { %2347 = vmatprep.subr.bf16.mxu0 %v2793_v4 }
 0x189   :  { %v2179_v28 = vpop.f32.mrb[0].mxu0 }
 0x18a   :  { %v2180_v30 = vpop.f32.mrb[1].mxu0 }
 0x18b   :  { %v2181_v31 = vadd.f32 %v2180_v30, %v2179_v28  ;;  %v2182_v32 = vpop.f32.mrb[2].mxu0  ;;  %v2201_v33 = vpop.f32.mrb[0].mxu1 }
 0x18c   :  { %v2183_v34 = vpop.f32.mrb[3].mxu0  ;;  %v2202_v37 = vpop.f32.mrb[1].mxu1 }
 0x18d   :  { %v576_v35 = vadd.f32 %v2181_v31, %v2050_v29  ;;  %v2184_v36 = vadd.f32 %v2183_v34, %v2182_v32  ;;  %v2203_v38 = vadd.f32 %v2202_v37, %v2201_v33  ;;  %v2204_v39 = vpop.f32.mrb[2].mxu1 }
 0x18e   :  { %v2205_v41 = vpop.f32.mrb[3].mxu1 }
 0x18f   :  { %v579_v40 = vadd.f32 %v2184_v36, %v2050_v29  ;;  %v617_v42 = vadd.f32 %v2203_v38, %v576_v35  ;;  %v2206_v43 = vadd.f32 %v2205_v41, %v2204_v39 }
 0x191   :  { %v620_v44 = vadd.f32 %v2206_v43, %v579_v40 }
 0x1a9   :  { %v2223_v45 = vpop.f32.mrb[4].mxu0 }
 0x1aa   :  { %v2224_v46 = vpop.f32.mrb[5].mxu0 }
 0x1ab   :  { %v2225_v47 = vadd.f32 %v2224_v46, %v2223_v45  ;;  %v2226_v48 = vpop.f32.mrb[6].mxu0 }
 0x1ac   :  { %v2227_v49 = vpop.f32.mrb[7].mxu0 }
 0x1ad   :  { %v658_v50 = vadd.f32 %v2225_v47, %v617_v42  ;;  %v2228_v51 = vadd.f32 %v2227_v49, %v2226_v48 }
 0x1af   :  { %v661_v52 = vadd.f32 %v2228_v51, %v620_v44 }
 0x1b1   :  { %v664_v53 = vpack.c.bf16 %v661_v52, %v658_v50 }
 0x1b3   :  { %875 = vmatmul.mubr.bf16.vlgmr.msra.gmra.mrb[4].mxu1 %v664_v53  ;;  %2296 = vmatmul.mubr.bf16.vlgmr.msra.gmra.mrb[8].mxu0 %v664_v53 }
 0x1b4   :  { %2301 = vmatprep.mubr.msk.bf16.mxu1 %vm2795_vm0, %v2793_v4  ;;  %2349 = vmatprep.mubr.msk.bf16.mxu0 %vm2795_vm0, %v2793_v4 }
 0x286   :  { %v876_v61 = vpop.f32.mrb[4].mxu1  ;;  %v919_v62 = vpop.f32.mrb[8].mxu0 }
 0x287   :  { %v878_v0 = vpop.f32.mrb[5].mxu1  ;;  %v2297_v1 = vpop.f32.mrb[9].mxu0  ;;  %v877_v13 = vadd.f32 %v876_v61, %v702_v9  ;;  %v920_v16 = vadd.f32 %v919_v62, %v710_v63 }
 0x288   :  { %v879_v2 = vadd.f32 %v878_v0, %v706_v59  ;;  %v880_v3 = vpop.f32.mrb[6].mxu1  ;;  %v922_v5 = vpop.f32.mrb[10].mxu0 }
 0x289   :  { %v2969_v6 = vadd.f32 %v922_v5, %v710_v63  ;;  %v882_v7 = vpop.f32.mrb[7].mxu1  ;;  %v2298_v8 = vpop.f32.mrb[11].mxu0  ;;  %v2978_v15 = vpack.c.bf16 %v877_v13, %v877_v13  ;;  %v881_v18 = vadd.f32 %v880_v3, %v702_v9  ;;  %v2987_v19 = vpack.c.bf16 %v920_v16, %v920_v16 }
 0x28a   :  { %v2971_v10 = vpack.c.bf16 %v879_v2, %v879_v2  ;;  %v883_v11 = vadd.f32 %v882_v7, %v706_v59 }
 0x28b   :  { %v2989_v20 = vpack.c.bf16 %v881_v18, %v881_v18  ;;  %v1067_v21 = vsel %vm1065_vm2, %v2987_v19, 0  ;;  %v3012_v45 = vpack.c.bf16 %v2969_v6, %v2969_v6 }
 0x28c   :  { %v949_v12 = vsel %vm944_vm1, %v2971_v10, 0  ;;  %v2976_v14 = vpack.c.bf16 %v883_v11, %v883_v11 }
 0x28d   :  { %2300 = vmatpush3.bf16.xpose.msra.mxu1 %v949_v12  ;;  %v1113_v48 = vsel %vm1065_vm2, %v3012_v45, 0 }
 0x28e   :  { %2305 = vmatprep.subr.bf16.mxu1 %v2793_v4  ;;  %v995_v17 = vsel %vm944_vm1, %v2976_v14, 0 }
 0x294   :  { %2302 = vmatmul.mubr.msk.bf16.vlgmr.msra.gmra.mrb[8].mxu1 %vm944_vm1, %v2978_v15 }
 0x295   :  { %2306 = vmatpush3.bf16.xpose.msra.mxu1 %v995_v17  ;;  %2307 = vmatprep.mubr.msk.bf16.mxu1 %vm2795_vm0, %v2793_v4 }
 0x296   :  { %2311 = vmatprep.subr.bf16.mxu1 %v2793_v4 }
 0x29c   :  { %2308 = vmatmul.mubr.msk.bf16.vlgmr.msra.gmra.mrb[12].mxu1 %vm944_vm1, %v2989_v20 }
 0x29d   :  { %2312 = vmatpush3.bf16.msra.mxu1 %v1067_v21  ;;  %2313 = vmatprep.mubr.msk.bf16.mxu1 %vm2795_vm0, %v2793_v4 }
 0x29e   :  { %2317 = vmatprep.subr.bf16.mxu1 %v2793_v4 }
 0x367   :  { %v985_v22 = vpop.f32.mrb[8].mxu1 }
 0x368   :  { %v2303_v23 = vpop.f32.mrb[9].mxu1  ;;  %v1038_v24 = vsel %vm1037_vm3, %v985_v22, -inf }
 0x369   :  { %1039 = vmax.xlane.f32.xlu0 %v1038_v24  ;;  %v988_v25 = vpop.f32.mrb[10].mxu1 }
 0x36a   :  { %v2304_v26 = vpop.f32.mrb[11].mxu1 }
 0x36f   :  { %v1031_v27 = vpop.f32.mrb[12].mxu1 }
 0x370   :  { %v2309_v28 = vpop.f32.mrb[13].mxu1  ;;  %v1041_v29 = vsel %vm1037_vm3, %v1031_v27, -inf }
 0x371   :  { %1042 = vmax.xlane.f32.xlu0 %v1041_v29  ;;  %v1034_v30 = vpop.f32.mrb[14].mxu1 }
 0x372   :  { %v2310_v31 = vpop.f32.mrb[15].mxu1 }
 0x387   :  { %1159 = vrot.lane.b32.xlu0 %v2971_v10, %s2796_s7 }
 0x3f6   :  { %v1040_v32 = vpop.xlane.xlu0 %1039 }
 0x3f7   :  { %v1044_v33 = vsub.f32 %v985_v22, %v1040_v32 }
 0x3f9   :  { %v1046_v34 = vmul.f32 1.442695, %v1044_v33 }
 0x3fb   :  { %2525 = vpow2.f32 %v1046_v34 }
 0x3fe   :  { %v1043_v35 = vpop.xlane.xlu0 %1042 }
 0x3ff   :  { %v1045_v36 = vsub.f32 %v1031_v27, %v1043_v35 }
 0x401   :  { %v1048_v37 = vmul.f32 1.442695, %v1045_v36 }
 0x402   :  { %v1160_v51 = vpop.permute.xlu0 %1159 }
 0x403   :  { %2527 = vpow2.f32 %v1048_v37  ;;  %v1165_v54 = vsel %vm944_vm1, %v1160_v51, 0 }
 0x405   :  { %v2526_v38 = vpop.eup %2525 }
 0x406   :  { %v1050_v39 = vsel %vm1037_vm3, %v2526_v38, 0.0 }
 0x407   :  { %1051 = vadd.xlane.f32.xlu1 %v1050_v39 }
 0x40d   :  { %v2528_v40 = vpop.eup %2527 }
 0x40e   :  { %v1053_v41 = vsel %vm1037_vm3, %v2528_v40, 0.0 }
 0x40f   :  { %1054 = vadd.xlane.f32.xlu1 %v1053_v41 }
 0x420   :  { %1157 = vrot.lane.b32.xlu1 %v2978_v15, %s2796_s7 }
 0x424   :  { %1209 = vrot.lane.b32.xlu1 %v2976_v14, %s2796_s7 }
 0x428   :  { %1207 = vrot.lane.b32.xlu1 %v2989_v20, %s2796_s7 }
 0x494   :  { %v1052_v42 = vpop.xlane.xlu1 %1051 }
 0x495   :  { %2529 = vrcp.f32 %v1052_v42 }
 0x49c   :  { %v1055_v43 = vpop.xlane.xlu1 %1054 }
 0x49d   :  { %2531 = vrcp.f32 %v1055_v43 }
 0x49f   :  { %v2530_v44 = vpop.eup %2529 }
 0x4a0   :  { %v1057_v46 = vmul.f32 %v2530_v44, %v2526_v38  ;;  %v1158_v53 = vpop.permute.xlu1 %1157 }
 0x4a2   :  { %v1060_v47 = vpack.c.bf16 %v1057_v46, %v1057_v46 }
 0x4a4   :  { %2314 = vmatmul.mubr.msk.bf16.vlgmr.msra.gmra.mrb[16].mxu1 %vm1037_vm3, %v1060_v47  ;;  %v1210_v55 = vpop.permute.xlu1 %1209 }
 0x4a5   :  { %2318 = vmatpush3.bf16.msra.mxu1 %v1113_v48  ;;  %2319 = vmatprep.mubr.msk.bf16.mxu1 %vm2795_vm0, %v2793_v4  ;;  %v1215_v56 = vsel %vm944_vm1, %v1210_v55, 0 }
 0x4a6   :  { %2323 = vmatprep.subr.bf16.mxu1 %v2793_v4 }
 0x4a7   :  { %v2532_v49 = vpop.eup %2531 }
 0x4a8   :  { %v1059_v50 = vmul.f32 %v2532_v49, %v2528_v40  ;;  %v1208_v57 = vpop.permute.xlu1 %1207 }
 0x4aa   :  { %v1061_v52 = vpack.c.bf16 %v1059_v50, %v1059_v50 }
 0x4ac   :  { %2320 = vmatmul.mubr.msk.bf16.vlgmr.msra.gmra.mrb[20].mxu1 %vm1037_vm3, %v1061_v52 }
 0x4ad   :  { %2325 = vmatprep.mubr.msk.bf16.mxu1 %vm2795_vm0, %v2793_v4 }
 0x4ae   :  { %2324 = vmatpush3.bf16.xpose.msra.mxu1 %v1165_v54 }
 0x4af   :  { %2329 = vmatprep.subr.bf16.mxu1 %v2793_v4 }
 0x4b5   :  { %2326 = vmatmul.mubr.msk.bf16.vlgmr.msra.gmra.mrb[24].mxu1 %vm944_vm1, %v1158_v53 }
 0x4b6   :  { %2330 = vmatpush3.bf16.xpose.msra.mxu1 %v1215_v56  ;;  %2331 = vmatprep.mubr.msk.bf16.mxu1 %vm2795_vm0, %v2793_v4 }
 0x4b7   :  { %2335 = vmatprep.subr.bf16.mxu1 %v2793_v4 }
 0x4bd   :  { %2332 = vmatmul.mubr.msk.bf16.vlgmr.msra.gmra.mrb[28].mxu1 %vm944_vm1, %v1208_v57 }
 0x4be   :  { %2337 = vmatprep.mubr.msk.bf16.mxu1 %vm2795_vm0, %v2793_v4 }
 0x577   :  { %v1103_v58 = vpop.f32.mrb[16].mxu1 }
 0x578   :  { %v2315_v59 = vpop.f32.mrb[17].mxu1 }
 0x579   :  { %v1106_v60 = vpop.f32.mrb[18].mxu1 }
 0x57a   :  { %v2316_v61 = vpop.f32.mrb[19].mxu1 }
 0x57f   :  { %v1149_v62 = vpop.f32.mrb[20].mxu1 }
 0x580   :  { %v1155_v63 = vpack.c.bf16 %v1149_v62, %v1103_v58  ;;  %v2321_v0 = vpop.f32.mrb[21].mxu1 }
 0x581   :  { %v1152_v1 = vpop.f32.mrb[22].mxu1 }
 0x582   :  { %1156 = vst.msk [vmem:[#allocation2] sm:$0xff] %vm944_vm1, %v1155_v63  ;;  %v2322_v2 = vpop.f32.mrb[23].mxu1 }
 0x588   :  { %v1201_v3 = vpop.f32.mrb[24].mxu1 }
 0x589   :  { %v2327_v5 = vpop.f32.mrb[25].mxu1  ;;  %v1257_v6 = vsel %vm1037_vm3, %v1201_v3, -inf }
 0x58a   :  { %1258 = vmax.xlane.f32.xlu0 %v1257_v6  ;;  %v1204_v7 = vpop.f32.mrb[26].mxu1 }
 0x58b   :  { %v2328_v8 = vpop.f32.mrb[27].mxu1 }
 0x590   :  { %v1251_v9 = vpop.f32.mrb[28].mxu1 }
 0x591   :  { %v2333_v11 = vpop.f32.mrb[29].mxu1  ;;  %v1260_v12 = vsel %vm1037_vm3, %v1251_v9, -inf }
 0x592   :  { %1261 = vmax.xlane.f32.xlu1 %v1260_v12  ;;  %v1254_v13 = vpop.f32.mrb[30].mxu1 }
 0x593   :  { %v2334_v16 = vpop.f32.mrb[31].mxu1 }
 0x5a3   :  { %1329 = vrot.lane.b32.xlu1 %v3012_v45, %s2796_s7 }
 0x5a7   :  { %1386 = vrot.lane.b32.xlu1 %v2971_v10, %s2780_s15 }
 0x5ab   :  { %1436 = vrot.lane.b32.xlu1 %v2976_v14, %s2780_s15 }
 0x5af   :  { %1434 = vrot.lane.b32.xlu1 %v2989_v20, %s2780_s15 }
 0x617   :  { %v1259_v17 = vpop.xlane.xlu0 %1258 }
 0x618   :  { %v1263_v18 = vsub.f32 %v1201_v3, %v1259_v17 }
 0x61a   :  { %v1265_v21 = vmul.f32 1.442695, %v1263_v18 }
 0x61c   :  { %2533 = vpow2.f32 %v1265_v21 }
 0x61f   :  { %v1262_v22 = vpop.xlane.xlu1 %1261 }
 0x620   :  { %v1264_v23 = vsub.f32 %v1251_v9, %v1262_v22 }
 0x622   :  { %v1267_v24 = vmul.f32 1.442695, %v1264_v23 }
 0x623   :  { %v1330_v25 = vpop.permute.xlu1 %1329 }
 0x624   :  { %2535 = vpow2.f32 %v1267_v24  ;;  %v1335_v40 = vsel %vm1065_vm2, %v1330_v25, 0 }
 0x626   :  { %v2534_v26 = vpop.eup %2533 }
 0x627   :  { %v1387_v27 = vpop.permute.xlu1 %1386  ;;  %v1269_v28 = vsel %vm1037_vm3, %v2534_v26, 0.0 }
 0x628   :  { %v1392_v29 = vsel %vm944_vm1, %v1387_v27, 0  ;;  %1270 = vadd.xlane.f32.xlu0 %v1269_v28 }
 0x629   :  { %2348 = vmatpush3.bf16.xpose.msra.mxu0 %v1392_v29 }
 0x62a   :  { %2359 = vmatprep.subr.bf16.mxu0 %v2793_v4 }
 0x62b   :  { %v1437_v44 = vpop.permute.xlu1 %1436 }
 0x62c   :  { %v1442_v46 = vsel %vm944_vm1, %v1437_v44, 0 }
 0x62e   :  { %v2536_v30 = vpop.eup %2535 }
 0x62f   :  { %v1272_v31 = vsel %vm1037_vm3, %v2536_v30, 0.0  ;;  %v1435_v47 = vpop.permute.xlu1 %1434 }
 0x630   :  { %1273 = vadd.xlane.f32.xlu0 %v1272_v31 }
 0x646   :  { %1281 = vrot.lane.b32.xlu0 %v2987_v19, %s2796_s7 }
 0x64a   :  { %1384 = vrot.lane.b32.xlu0 %v2978_v15, %s2780_s15 }
 0x6b5   :  { %v1271_v32 = vpop.xlane.xlu0 %1270 }
 0x6b6   :  { %2537 = vrcp.f32 %v1271_v32 }
 0x6bd   :  { %v1274_v33 = vpop.xlane.xlu0 %1273 }
 0x6be   :  { %2539 = vrcp.f32 %v1274_v33 }
 0x6c0   :  { %v2538_v34 = vpop.eup %2537 }
 0x6c1   :  { %v1276_v35 = vmul.f32 %v2538_v34, %v2534_v26  ;;  %v1282_v36 = vpop.permute.xlu0 %1281 }
 0x6c2   :  { %v1287_v37 = vsel %vm1065_vm2, %v1282_v36, 0 }
 0x6c3   :  { %2336 = vmatpush3.bf16.msra.mxu1 %v1287_v37  ;;  %v1279_v38 = vpack.c.bf16 %v1276_v35, %v1276_v35 }
 0x6c4   :  { %2341 = vmatprep.subr.bf16.mxu1 %v2793_v4 }
 0x6c5   :  { %v1385_v39 = vpop.permute.xlu0 %1384 }
 0x6c6   :  { %2338 = vmatmul.mubr.msk.bf16.vlgmr.msra.gmra.mrb[32].mxu1 %vm1037_vm3, %v1279_v38  ;;  %2350 = vmatmul.mubr.msk.bf16.vlgmr.msra.gmra.mrb[12].mxu0 %vm944_vm1, %v1385_v39 }
 0x6c7   :  { %2342 = vmatpush3.bf16.msra.mxu1 %v1335_v40  ;;  %2343 = vmatprep.mubr.msk.bf16.mxu1 %vm2795_vm0, %v2793_v4 }
 0x6c8   :  { %v2540_v41 = vpop.eup %2539  ;;  %2353 = vmatprep.subr.bf16.mxu1 %v2793_v4  ;;  %2361 = vmatprep.mubr.msk.bf16.mxu0 %vm2795_vm0, %v2793_v4 }
 0x6c9   :  { %v1278_v42 = vmul.f32 %v2540_v41, %v2536_v30 }
 0x6cb   :  { %v1280_v43 = vpack.c.bf16 %v1278_v42, %v1278_v42 }
 0x6ce   :  { %2344 = vmatmul.mubr.msk.bf16.vlgmr.msra.gmra.mrb[36].mxu1 %vm1037_vm3, %v1280_v43 }
 0x6cf   :  { %2355 = vmatprep.mubr.msk.bf16.mxu1 %vm2795_vm0, %v2793_v4 }
 0x6d0   :  { %2354 = vmatpush3.bf16.xpose.msra.mxu1 %v1442_v46 }
 0x6d1   :  { %2365 = vmatprep.subr.bf16.mxu1 %v2793_v4 }
 0x6d7   :  { %2356 = vmatmul.mubr.msk.bf16.vlgmr.msra.gmra.mrb[40].mxu1 %vm944_vm1, %v1435_v47 }
 0x6d8   :  { %2367 = vmatprep.mubr.msk.bf16.mxu1 %vm2795_vm0, %v2793_v4 }
 0x799   :  { %v3070_v48 = vpop.f32.mrb[32].mxu1  ;;  %v1428_v49 = vpop.f32.mrb[12].mxu0 }
 0x79a   :  { %v2339_v50 = vpop.f32.mrb[33].mxu1  ;;  %v2351_v51 = vpop.f32.mrb[13].mxu0  ;;  %v1484_v52 = vsel %vm1037_vm3, %v1428_v49, -inf }
 0x79b   :  { %1485 = vmax.xlane.f32.xlu0 %v1484_v52  ;;  %v1326_v53 = vpop.f32.mrb[34].mxu1  ;;  %v1431_v54 = vpop.f32.mrb[14].mxu0 }
 0x79c   :  { %v2340_v55 = vpop.f32.mrb[35].mxu1  ;;  %v2352_v56 = vpop.f32.mrb[15].mxu0 }
 0x7a1   :  { %v3073_v57 = vpop.f32.mrb[36].mxu1 }
 0x7a2   :  { %v1377_v58 = vpack.c.bf16 %v3073_v57, %v3070_v48  ;;  %v2345_v59 = vpop.f32.mrb[37].mxu1 }
 0x7a3   :  { %v1374_v60 = vpop.f32.mrb[38].mxu1 }
 0x7a4   :  { %v2346_v61 = vpop.f32.mrb[39].mxu1 }
 0x7aa   :  { %v1478_v62 = vpop.f32.mrb[40].mxu1 }
 0x7ab   :  { %v2357_v63 = vpop.f32.mrb[41].mxu1  ;;  %v1487_v0 = vsel %vm1037_vm3, %v1478_v62, -inf }
 0x7ac   :  { %1488 = vmax.xlane.f32.xlu1 %v1487_v0  ;;  %v1481_v1 = vpop.f32.mrb[42].mxu1 }
 0x7ad   :  { %v2358_v2 = vpop.f32.mrb[43].mxu1 }
 0x7bd   :  { %1556 = vrot.lane.b32.xlu1 %v3012_v45, %s2780_s15 }
 0x7c1   :  { %1613 = vrot.lane.b32.xlu1 %v2971_v10, %s2797_s2 }
 0x7c5   :  { %1663 = vrot.lane.b32.xlu1 %v2976_v14, %s2797_s2 }
 0x7c9   :  { %1661 = vrot.lane.b32.xlu1 %v2989_v20, %s2797_s2 }
 0x828   :  { %v1486_v3 = vpop.xlane.xlu0 %1485 }
 0x829   :  { %v1490_v5 = vsub.f32 %v1428_v49, %v1486_v3 }
 0x82b   :  { %v1492_v6 = vmul.f32 1.442695, %v1490_v5 }
 0x82d   :  { %2541 = vpow2.f32 %v1492_v6 }
 0x837   :  { %v2542_v7 = vpop.eup %2541 }
 0x838   :  { %v1496_v8 = vsel %vm1037_vm3, %v2542_v7, 0.0 }
 0x839   :  { %1497 = vadd.xlane.f32.xlu0 %v1496_v8  ;;  %v1489_v9 = vpop.xlane.xlu1 %1488 }
 0x83a   :  { %v1491_v11 = vsub.f32 %v1478_v62, %v1489_v9 }
 0x83c   :  { %v1494_v12 = vmul.f32 1.442695, %v1491_v11 }
 0x83d   :  { %v1557_v13 = vpop.permute.xlu1 %1556 }
 0x83e   :  { %2543 = vpow2.f32 %v1494_v12  ;;  %v1562_v10 = vsel %vm1065_vm2, %v1557_v13, 0  ;;  %v2515_v13 = vld [vmem:[#allocation12] sm:$0xff]  }
 0x83f   :  { %2366 = vmatpush3.bf16.msra.mxu1 %v1562_v10  ;;  %v2516_v10 = vld [vmem:[#allocation12 + $0x8] sm:$0xff]  }
 0x840   :  { %2377 = vmatprep.subr.bf16.mxu1 %v2793_v4 }
 0x841   :  { %v1614_v24 = vpop.permute.xlu1 %1613 }
 0x842   :  { %v1619_v28 = vsel %vm944_vm1, %v1614_v24, 0 }
 0x845   :  { %v1664_v27 = vpop.permute.xlu1 %1663 }
 0x846   :  { %v1669_v30 = vsel %vm944_vm1, %v1664_v27, 0 }
 0x848   :  { %v2544_v14 = vpop.eup %2543 }
 0x849   :  { %v1499_v20 = vsel %vm1037_vm3, %v2544_v14, 0.0  ;;  %v1662_v32 = vpop.permute.xlu1 %1661 }
 0x84a   :  { %1500 = vadd.xlane.f32.xlu0 %v1499_v20  ;;  %v2518_v20 = vld [vmem:[#allocation12 + $0x18] sm:$0xff]  }
 0x860   :  { %1508 = vrot.lane.b32.xlu0 %v2987_v19, %s2780_s15 }
 0x864   :  { %1611 = vrot.lane.b32.xlu0 %v2978_v15, %s2797_s2 }
 0x8c6   :  { %v1498_v16 = vpop.xlane.xlu0 %1497 }
 0x8c7   :  { %2545 = vrcp.f32 %v1498_v16  ;;  %v2519_v16 = vld [vmem:[#allocation12 + $0x20] sm:$0xff]  }
 0x8d1   :  { %v2546_v17 = vpop.eup %2545 }
 0x8d2   :  { %v1503_v21 = vmul.f32 %v2546_v17, %v2542_v7  ;;  %v2520_v17 = vld [vmem:[#allocation12 + $0x28] sm:$0xff]  }
 0x8d4   :  { %v1506_v25 = vpack.c.bf16 %v1503_v21, %v1503_v21  ;;  %v2522_v21 = vld [vmem:[#allocation12 + $0x38] sm:$0xff]  }
 0x8d7   :  { %v1501_v18 = vpop.xlane.xlu0 %1500 }
 0x8d8   :  { %2547 = vrcp.f32 %v1501_v18  ;;  %v2521_v18 = vld [vmem:[#allocation12 + $0x30] sm:$0xff]  }
 0x8db   :  { %v1509_v22 = vpop.permute.xlu0 %1508 }
 0x8dc   :  { %v1514_v23 = vsel %vm1065_vm2, %v1509_v22, 0 }
 0x8dd   :  { %2360 = vmatpush3.bf16.msra.mxu0 %v1514_v23 }
 0x8de   :  { %2371 = vmatprep.subr.bf16.mxu0 %v2793_v4 }
 0x8df   :  { %v1612_v31 = vpop.permute.xlu0 %1611 }
 0x8e0   :  { %2362 = vmatmul.mubr.msk.bf16.vlgmr.msra.gmra.mrb[16].mxu0 %vm1037_vm3, %v1506_v25 }
 0x8e1   :  { %2373 = vmatprep.mubr.msk.bf16.mxu0 %vm2795_vm0, %v2793_v4 }
 0x8e2   :  { %v2548_v15 = vpop.eup %2547 }
 0x8e3   :  { %v1505_v26 = vmul.f32 %v2548_v15, %v2544_v14  ;;  %v2517_v14 = vld [vmem:[#allocation12 + $0x10] sm:$0xff]  }
 0x8e5   :  { %v1507_v29 = vpack.c.bf16 %v1505_v26, %v1505_v26 }
 0x8e6   :  { %2372 = vmatpush3.bf16.xpose.msra.mxu0 %v1619_v28 }
 0x8e7   :  { %2368 = vmatmul.mubr.msk.bf16.vlgmr.msra.gmra.mrb[44].mxu1 %vm1037_vm3, %v1507_v29  ;;  %2383 = vmatprep.subr.bf16.mxu0 %v2793_v4 }
 0x8e8   :  { %2378 = vmatpush3.bf16.xpose.msra.mxu1 %v1669_v30  ;;  %2379 = vmatprep.mubr.msk.bf16.mxu1 %vm2795_vm0, %v2793_v4 }
 0x8e9   :  { %2389 = vmatprep.subr.bf16.mxu1 %v2793_v4 }
 0x8ed   :  { %2374 = vmatmul.mubr.msk.bf16.vlgmr.msra.gmra.mrb[20].mxu0 %vm944_vm1, %v1612_v31 }
 0x8ee   :  { %2385 = vmatprep.mubr.msk.bf16.mxu0 %vm2795_vm0, %v2793_v4 }
 0x8ef   :  { %2380 = vmatmul.mubr.msk.bf16.vlgmr.msra.gmra.mrb[48].mxu1 %vm944_vm1, %v1662_v32  ;;  %v2145_v32 = vld [vmem:[#allocation14] ss:$0 sm:$0xff] }
 0x8f0   :  { %2391 = vmatprep.mubr.msk.bf16.mxu1 %vm2795_vm0, %v2793_v4 }
 0x9b3   :  { %v1550_v33 = vpop.f32.mrb[16].mxu0 }
 0x9b4   :  { %v2363_v34 = vpop.f32.mrb[17].mxu0 }
 0x9b5   :  { %v1553_v35 = vpop.f32.mrb[18].mxu0 }
 0x9b6   :  { %v2364_v36 = vpop.f32.mrb[19].mxu0 }
 0x9ba   :  { %v1598_v37 = vpop.f32.mrb[44].mxu1 }
 0x9bb   :  { %v1604_v38 = vpack.c.bf16 %v1598_v37, %v1550_v33  ;;  %v2369_v39 = vpop.f32.mrb[45].mxu1 }
 0x9bc   :  { %v1601_v40 = vpop.f32.mrb[46].mxu1 }
 0x9bd   :  { %v2370_v41 = vpop.f32.mrb[47].mxu1 }
 0x9c0   :  { %v1655_v42 = vpop.f32.mrb[20].mxu0 }
 0x9c1   :  { %v2375_v43 = vpop.f32.mrb[21].mxu0  ;;  %v1711_v44 = vsel %vm1037_vm3, %v1655_v42, -inf }
 0x9c2   :  { %1712 = vmax.xlane.f32.xlu0 %v1711_v44  ;;  %v1658_v46 = vpop.f32.mrb[22].mxu0  ;;  %v1705_v47 = vpop.f32.mrb[48].mxu1 }
 0x9c3   :  { %v2376_v49 = vpop.f32.mrb[23].mxu0  ;;  %v2381_v50 = vpop.f32.mrb[49].mxu1  ;;  %v1714_v51 = vsel %vm1037_vm3, %v1705_v47, -inf }
 0x9c4   :  { %1715 = vmax.xlane.f32.xlu1 %v1714_v51  ;;  %v1708_v52 = vpop.f32.mrb[50].mxu1 }
 0x9c5   :  { %v2382_v53 = vpop.f32.mrb[51].mxu1 }
 0x9d5   :  { %1783 = vrot.lane.b32.xlu1 %v3012_v45, %s2797_s2 }
 0x9d9   :  { %1379 = vrot.lane.b32.xlu1 %v1377_v58, %s2797_s2 }
 0x9dd   :  { %1606 = vrot.lane.b32.xlu1 %v1604_v38, %s2780_s15  ;;  %v2154_v38 = vld [vmem:[#allocation15] ss:$0 sm:$0xff]  ;;  %s2798_s15 = smov [#allocation17]  }
 0x9de   :  { %s2037_s11 = sshll.u32 %s2798_s15, 4  ;;  %s2038_s11 = int_to_ptr.vmem [resolvable:$true] %s2037_s11 }
 0x9df   :  { %s2745_s12 = scalar_lea.vmem %s2038_s11, 32  ;;  %p2750_p9 = scmp.lt.s32.totalorder %s2038_s11, %s2038_s11 }
 0x9e0   :  { %p2746_p8 = scmp.ne.s32.totalorder %s2038_s11, %s2745_s12  ;;  %p2751_p10 = scmp.lt.s32.totalorder %s2745_s12, %s2745_s12 }
 0x9e2   :  { %p2752_p11 = por %p2751_p10, %p2750_p9 }
 0x9e4   :  { %p2753_p12 = pnand %p2752_p11, %p2746_p8 }
 0xa4f   :  { %v1713_v54 = vpop.xlane.xlu0 %1712 }
 0xa50   :  { %v1717_v55 = vsub.f32 %v1655_v42, %v1713_v54 }
 0xa51   :  { %v1716_v56 = vpop.xlane.xlu1 %1715 }
 0xa52   :  { %v1719_v59 = vmul.f32 1.442695, %v1717_v55  ;;  %v1718_v60 = vsub.f32 %v1705_v47, %v1716_v56 }
 0xa54   :  { %2549 = vpow2.f32 %v1719_v59  ;;  %v1721_v61 = vmul.f32 1.442695, %v1718_v60 }
 0xa55   :  { %v1784_v62 = vpop.permute.xlu1 %1783 }
 0xa56   :  { %2551 = vpow2.f32 %v1721_v61  ;;  %v1789_v63 = vsel %vm1065_vm2, %v1784_v62, 0 }
 0xa57   :  { %2390 = vmatpush3.bf16.msra.mxu1 %v1789_v63 }
 0xa59   :  { %v1380_v45 = vpop.permute.xlu1 %1379 }
 0xa5a   :  { %1383 = vst.msk [vmem:[#allocation2] sm:$0xff] %vm1382_vm4, %v1380_v45 }
 0xa5d   :  { %v1607_v48 = vpop.permute.xlu1 %1606 }
 0xa5e   :  { %v2550_v57 = vpop.eup %2549  ;;  %1610 = vst.msk [vmem:[#allocation2] sm:$0xff] %vm1609_vm5, %v1607_v48 }
 0xa5f   :  { %v1723_v58 = vsel %vm1037_vm3, %v2550_v57, 0.0 }
 0xa60   :  { %v2552_v0 = vpop.eup %2551  ;;  %1724 = vadd.xlane.f32.xlu0 %v1723_v58 }
 0xa61   :  { %v1726_v1 = vsel %vm1037_vm3, %v2552_v0, 0.0 }
 0xa64   :  { %1727 = vadd.xlane.f32.xlu0 %v1726_v1 }
 0xa7a   :  { %1735 = vrot.lane.b32.xlu0 %v2987_v19, %s2797_s2 }
 0xaed   :  { %v1725_v2 = vpop.xlane.xlu0 %1724 }
 0xaee   :  { %2553 = vrcp.f32 %v1725_v2 }
 0xaf1   :  { %v1728_v3 = vpop.xlane.xlu0 %1727 }
 0xaf2   :  { %2555 = vrcp.f32 %v1728_v3 }
 0xaf5   :  { %v1736_v5 = vpop.permute.xlu0 %1735 }
 0xaf6   :  { %v1741_v6 = vsel %vm1065_vm2, %v1736_v5, 0 }
 0xaf7   :  { %2384 = vmatpush3.bf16.msra.mxu0 %v1741_v6 }
 0xaf8   :  { %v2554_v7 = vpop.eup %2553  ;;  %2395 = vmatprep.subr.bf16.mxu0 %v2793_v4 }
 0xaf9   :  { %v1730_v8 = vmul.f32 %v2554_v7, %v2550_v57 }
 0xafb   :  { %v1733_v9 = vpack.c.bf16 %v1730_v8, %v1730_v8 }
 0xafc   :  { %v2556_v11 = vpop.eup %2555 }
 0xafd   :  { %v1732_v12 = vmul.f32 %v2556_v11, %v2552_v0  ;;  %2386 = vmatmul.mubr.msk.bf16.vlgmr.msra.gmra.mrb[24].mxu0 %vm1037_vm3, %v1733_v9 }
 0xafe   :  { %2411 = vmatprep.mubr.msk.bf16.mxu0 %vm2795_vm0, %v2793_v4  ;;  %2396 = vmatpush3.bf16.msra.mxu0 %v2515_v13 }
 0xaff   :  { %v1734_v19 = vpack.c.bf16 %v1732_v12, %v1732_v12  ;;  %2397 = vmatprep.subr.bf16.mxu0 %v2793_v4 }
 0xb01   :  { %2392 = vmatmul.mubr.msk.bf16.vlgmr.msra.gmra.mrb[52].mxu1 %vm1037_vm3, %v1734_v19 }
 0xb02   :  { %2398 = vmatpush3.bf16.msra.mxu0 %v2516_v10 }
 0xb03   :  { %2399 = vmatprep.subr.bf16.mxu0 %v2793_v4 }
 0xb06   :  { %2400 = vmatpush3.bf16.msra.mxu0 %v2517_v14 }
 0xb07   :  { %2401 = vmatprep.subr.bf16.mxu0 %v2793_v4 }
 0xb0a   :  { %2402 = vmatpush3.bf16.msra.mxu0 %v2518_v20 }
 0xb0b   :  { %2403 = vmatprep.subr.bf16.mxu0 %v2793_v4 }
 0xb0e   :  { %2404 = vmatpush3.bf16.msra.mxu0 %v2519_v16 }
 0xb0f   :  { %2405 = vmatprep.subr.bf16.mxu0 %v2793_v4 }
 0xb12   :  { %2406 = vmatpush3.bf16.msra.mxu0 %v2520_v17 }
 0xb13   :  { %2407 = vmatprep.subr.bf16.mxu0 %v2793_v4 }
 0xb16   :  { %2408 = vmatpush3.bf16.msra.mxu0 %v2521_v18 }
 0xb17   :  { %2409 = vmatprep.subr.bf16.mxu0 %v2793_v4 }
 0xb1a   :  { %2410 = vmatpush3.bf16.msra.mxu0 %v2522_v21 }
 0xbd0   :  { %v1777_v22 = vpop.f32.mrb[24].mxu0 }
 0xbd1   :  { %v2387_v23 = vpop.f32.mrb[25].mxu0 }
 0xbd2   :  { %v1780_v24 = vpop.f32.mrb[26].mxu0 }
 0xbd3   :  { %v2388_v25 = vpop.f32.mrb[27].mxu0 }
 0xbd4   :  { %v1825_v15 = vpop.f32.mrb[52].mxu1 }
 0xbd5   :  { %v1831_v26 = vpack.c.bf16 %v1825_v15, %v1777_v22  ;;  %v2393_v27 = vpop.f32.mrb[53].mxu1 }
 0xbd6   :  { %v1828_v28 = vpop.f32.mrb[54].mxu1 }
 0xbd7   :  { %1833 = vrot.lane.b32.xlu0 %v1831_v26, %s2796_s7  ;;  %v2394_v29 = vpop.f32.mrb[55].mxu1 }
 0xc49   :  { %v1834_v30 = vpop.permute.xlu0 %1833 }
 0xc4a   :  { %1837 = vst.msk [vmem:[#allocation2] sm:$0xff] %vm1836_vm6, %v1834_v30 }
 0xc51   :  { %v1838_v31 = vld [vmem:[#allocation2] sm:$0xff] }
 0xc52   :  { %2412 = vmatmul.mubr.bf16.vlgmr.msra.gmra.mrb[28].mxu0 %v1838_v31  ;;  %v2155_v10 = vcombine.low %v1838_v31, %v1838_v31  ;;  %v2156_v14 = vcombine.high %v1838_v31, %v1838_v31 }
 0xc54   :  { %v2009_v16 = vunpack.c.l.bf16 %v2155_v10  ;;  %v2010_v21 = vunpack.c.l.bf16 %v2156_v14 }
 0xd25   :  { %v1944_v33 = vpop.f32.mrb[28].mxu0 }
 0xd26   :  { %v1945_v4 = vadd.f32 %v2145_v32, %v1944_v33  ;;  %v2413_v34 = vpop.f32.mrb[29].mxu0 }
 0xd27   :  { %v1947_v35 = vpop.f32.mrb[30].mxu0 }
 0xd28   :  { %2557 = vtanh.f32 %v1945_v4  ;;  %v1948_v36 = vadd.f32 %v2145_v32, %v1947_v35  ;;  %v2414_v37 = vpop.f32.mrb[31].mxu0 }
 0xd2a   :  { %2559 = vtanh.f32 %v1948_v36 }
 0xd32   :  { %v2558_v39 = vpop.eup %2557 }
 0xd33   :  { %v1960_v40 = vmul.f32 %v2558_v39, %v2154_v38 }
 0xd34   :  { %v2560_v41 = vpop.eup %2559 }
 0xd35   :  { %v1962_v42 = vsel %vm944_vm1, %v1960_v40, 0.0  ;;  %v1961_v43 = vmul.f32 %v2560_v41, %v2154_v38 }
 0xd36   :  { %1963 = vadd.xlane.f32.xlu1 %v1962_v42 }
 0xd37   :  { %v1965_v44 = vsel %vm944_vm1, %v1961_v43, 0.0 }
 0xd38   :  { %1966 = vadd.xlane.f32.xlu0 %v1965_v44 }
 0xdc3   :  { %v1964_v46 = vpop.xlane.xlu1 %1963 }
 0xdc4   :  { %v1968_v47 = vrot.slane %v1964_v46, 4 }
 0xdc5   :  { %v1967_v49 = vpop.xlane.xlu0 %1966 }
 0xdc6   :  { %v1969_v50 = vmax.f32 %v1964_v46, %v1968_v47  ;;  %v1974_v51 = vrot.slane %v1967_v49, 4 }
 0xdc8   :  { %v1970_v52 = vrot.slane %v1969_v50, 2  ;;  %v1975_v53 = vmax.f32 %v1967_v49, %v1974_v51 }
 0xdca   :  { %v1971_v54 = vmax.f32 %v1969_v50, %v1970_v52  ;;  %v1976_v55 = vrot.slane %v1975_v53, 2 }
 0xdcc   :  { %v1972_v56 = vrot.slane %v1971_v54, 1  ;;  %v1977_v59 = vmax.f32 %v1975_v53, %v1976_v55 }
 0xdce   :  { %v1973_v60 = vmax.f32 %v1971_v54, %v1972_v56  ;;  %v1978_v61 = vrot.slane %v1977_v59, 1 }
 0xdd0   :  { %v1980_v62 = vsub.f32 %v1964_v46, %v1973_v60  ;;  %v1979_v63 = vmax.f32 %v1977_v59, %v1978_v61 }
 0xdd2   :  { %v1982_v45 = vmul.f32 1.442695, %v1980_v62  ;;  %v1981_v48 = vsub.f32 %v1967_v49, %v1979_v63 }
 0xdd4   :  { %2561 = vpow2.f32 %v1982_v45  ;;  %v1984_v57 = vmul.f32 1.442695, %v1981_v48 }
 0xdd6   :  { %2563 = vpow2.f32 %v1984_v57 }
 0xdde   :  { %v2562_v58 = vpop.eup %2561 }
 0xddf   :  { %v1986_v0 = vrot.slane %v2562_v58, 4 }
 0xde0   :  { %v2564_v1 = vpop.eup %2563 }
 0xde1   :  { %v1987_v2 = vadd.f32 %v2562_v58, %v1986_v0  ;;  %v1992_v3 = vrot.slane %v2564_v1, 4 }
 0xde3   :  { %v1988_v5 = vrot.slane %v1987_v2, 2  ;;  %v1993_v6 = vadd.f32 %v2564_v1, %v1992_v3 }
 0xde5   :  { %v1994_v7 = vrot.slane %v1993_v6, 2  ;;  %v1989_v8 = vadd.f32 %v1988_v5, %v1987_v2 }
 0xde7   :  { %v1990_v9 = vrot.slane %v1989_v8, 1  ;;  %v1995_v11 = vadd.f32 %v1994_v7, %v1993_v6 }
 0xde9   :  { %v1991_v12 = vadd.f32 %v1990_v9, %v1989_v8  ;;  %v1996_v19 = vrot.slane %v1995_v11, 1 }
 0xdeb   :  { %v1997_v13 = vadd.f32 %v1996_v19, %v1995_v11  ;;  %2565 = vrcp.f32 %v1991_v12 }
 0xded   :  { %2567 = vrcp.f32 %v1997_v13 }
 0xdf5   :  { %v2566_v20 = vpop.eup %2565 }
 0xdf6   :  { %v1999_v17 = vmul.f32 %v2566_v20, %v2562_v58 }
 0xdf7   :  { %v2568_v18 = vpop.eup %2567 }
 0xdf8   :  { %v2001_v22 = vmul.f32 %v2568_v18, %v2564_v1  ;;  %v2011_v23 = vmul.f32 %v2009_v16, %v1999_v17 }
 0xdfa   :  { %v2012_v24 = vmul.f32 %v2010_v21, %v2001_v22  ;;  %v2013_v25 = vrot.slane %v2011_v23, 4 }
 0xdfc   :  { %v2014_v15 = vadd.f32 %v2013_v25, %v2011_v23  ;;  %v2019_v26 = vrot.slane %v2012_v24, 4 }
 0xdfe   :  { %v2015_v27 = vrot.slane %v2014_v15, 2  ;;  %v2020_v28 = vadd.f32 %v2019_v26, %v2012_v24 }
 0xe00   :  { %v2016_v29 = vadd.f32 %v2015_v27, %v2014_v15  ;;  %v2021_v30 = vrot.slane %v2020_v28, 2 }
 0xe02   :  { %v2017_v32 = vrot.slane %v2016_v29, 1  ;;  %v2022_v33 = vadd.f32 %v2021_v30, %v2020_v28 }
 0xe04   :  { %v2023_v4 = vrot.slane %v2022_v33, 1  ;;  %v2018_v31 = vadd.f32 %v2017_v32, %v2016_v29 }
 0xe06   :  { %v2024_v34 = vadd.f32 %v2023_v4, %v2022_v33 }
 0xe08   :  { %v2028_v35 = vsel %vm2027_vm7, %v2024_v34, %v2018_v31 }
 0xe09   :  { %2030 = vst [vmem:[#allocation17] sm:$0x3] %v2028_v35 }
 0xe0a   :  { %2756 = shalt.err (!%p2753_p12)
}
 0xe0b   :  { %s2757_s19 = scalar_lea.hbm %s3162_s8, 32 }
 0xe0c   :  { %p2758_p13 = scmp.ne.s32.totalorder %s3162_s8, %s2757_s19  ;;  %p2761_p0 = scmp.lt.u32.totalorder %s2757_s19, %s3162_s8 }
 0xe0e   :  { %p2763_p1 = pnand %p2761_p0, %p2758_p13 }
 0xe10   :  { %2766 = shalt.err (!%p2763_p1)
}
 0xe11   :  { %2040 = dma.vmem_to_hbm [thread:$0]  %s2038_s11, 32, %s3162_s8, [#allocation5]  }
 0xe12   :  { %2777 = dma.done.wait [#allocation5], 32  }
 0xe13   :  { %2778 = vsyncadd [#allocation5], 4294967264 }
 0xe14   :  { %2044 = vsyncpa [#allocation4], 1 }
 0xe15   :  { %2045 = vsyncpa [#allocation7], 1 }
 0xe16   :  { %2046 = vsyncpa [#allocation10], 1 }
 0xe17   :  { %2047 = vsyncpa [#allocation13], 1 }
 0xe18   :  { %2048 = vsyncpa [#allocation16], 1 }
 0xe19   :  { %2049 = vsyncpa [#allocation5], 1 }

</bundles_post_ra>
